<compile_context>
chip_gen: v7x
topology: tpu7x:2x2x1
jax: 0.10.0
libtpu: 0.0.40
codegen_flags: <defaults>
</compile_context>

<pallas_src>
import numpy as np
import jax
import jax.numpy as jnp
from jax.experimental import pallas as pl
from jax.experimental.pallas import tpu as pltpu

# ----------------------- module hyper-parameters (from __init__) -----------------
N_LEVELS = 16
FEATS_PER_LEVEL = 2
LOG2_HASHMAP = 19
TABLE_SIZE = 1 << LOG2_HASHMAP
BASE_RES = 16
FINE_RES = 2048
N_NEURONS = 64
DIM_IN = N_LEVELS * FEATS_PER_LEVEL + 3   # 35

CHUNK = 256                               # lanes processed per inner-loop iteration
TILE_MAX = 2048                           # points per grid step (multiple of CHUNK)
CF_ROWS = 8 * N_LEVELS                    # 128 rows per feature channel: [corner][level]
GEOM_ROWS = 6                             # rows 0..2 dirs, rows 3..5 dir_scaled


def _level_scales_and_res():
    per_level_scale = np.exp(np.log(FINE_RES / BASE_RES) / (N_LEVELS - 1))
    scales = np.array(
        [BASE_RES * per_level_scale ** l - 1.0 for l in range(N_LEVELS)], np.float64
    )
    res = np.ceil(scales).astype(np.int64) + 1
    return scales.astype(np.float32), res


_LEVEL_SCALES, _LEVEL_RES = _level_scales_and_res()


# ------------------------------- Pallas kernel -----------------------------------
def _softplus_beta(x, beta):
    # PyTorch nn.Softplus(beta, threshold=20) (VanillaMLP activation for sphere_init).
    bx = beta * x
    return jnp.where(bx > 20.0, x, jnp.log1p(jnp.exp(jnp.minimum(bx, 20.0))) / beta)


def geo_kernel(scales_ref, geom_ref, cf0_ref, cf1_ref,
               w0g_ref, w0f0_ref, w0f1_ref, b0_ref, w1_ref, b1_ref, w2_ref, b2_ref,
               o_ref):
    scales = scales_ref[...]                      # (16, 1) f32 per-level grid scales
    num_chunks = geom_ref.shape[1] // CHUNK       # static

    # Lane-chunked pipeline: a rolled loop bounds vreg live ranges so the 16-level blend
    # plus the per-chunk MLP never exceeds the 64-vreg register file, even at TILE=2048.
    @pl.loop(0, num_chunks)
    def _chunk(j):
        col = pl.multiple_of(j * CHUNK, CHUNK)
        lanes = pl.ds(col, CHUNK)

        # --- smoothstep fractions recomputed in-kernel from dir_scaled (no HBM frac stream).
        # NOTE: pos = dir_scaled*scale + 0.5 must match the XLA-side gather math bit-for-bit;
        # both sides compute mul-then-add in f32 on the identical dir_scaled array.  A 1-ulp
        # FMA difference could only matter for points landing exactly on a cell boundary.
        def smooth_w(row):
            p = geom_ref[row:row + 1, lanes] * scales + 0.5      # (16, CHUNK)
            f = p - jnp.floor(p)
            return f * f * (3.0 - 2.0 * f)                       # tcnn 'Smoothstep' weight

        wx = smooth_w(3)
        wy = smooth_w(4)
        wz = smooth_w(5)

        def lerp(a, b, w):
            return a + w * (b - a)

        # --- factorized trilinear blend over the 8 gathered corners (rows [corner][level]).
        def blend(cf_ref):
            def corner(c):                                       # corner c = bx + 2*by + 4*bz
                return cf_ref[c * N_LEVELS:(c + 1) * N_LEVELS, lanes].astype(jnp.float32)
            a00 = lerp(corner(0), corner(1), wx)                 # x-lerp, (by,bz)=(0,0)
            a10 = lerp(corner(2), corner(3), wx)                 # (1,0)
            a01 = lerp(corner(4), corner(5), wx)                 # (0,1)
            a11 = lerp(corner(6), corner(7), wx)                 # (1,1)
            bz0 = lerp(a00, a10, wy)
            bz1 = lerp(a01, a11, wy)
            return lerp(bz0, bz1, wz)                            # (16, CHUNK) f32

        feat0 = blend(cf0_ref).astype(jnp.bfloat16)              # feature 0, levels 0..15
        feat1 = blend(cf1_ref).astype(jnp.bfloat16)              # feature 1, levels 0..15
        geom_bf = geom_ref[:, lanes].astype(jnp.bfloat16)        # (6, CHUNK); dir_scaled rows
                                                                 # hit zero weight columns

        # --- VanillaMLP(35 -> 64 -> 64 -> 1), feature-major: h = W^T @ x + b (bf16 MXU,
        #     f32 accumulation).  Three accumulating dots replace the old feats concat.
        h = (jnp.dot(w0g_ref[...], geom_bf, preferred_element_type=jnp.float32)
             + jnp.dot(w0f0_ref[...], feat0, preferred_element_type=jnp.float32)
             + jnp.dot(w0f1_ref[...], feat1, preferred_element_type=jnp.float32)
             + b0_ref[...])                                      # (64, CHUNK) f32
        h = _softplus_beta(h, 100.0)
        h = (jnp.dot(w1_ref[...], h.astype(jnp.bfloat16), preferred_element_type=jnp.float32)
             + b1_ref[...])
        h = _softplus_beta(h, 100.0)
        # Layer 2 on the MXU (huge slack there) instead of a VPU mul + XLU sublane reduce.
        out = (jnp.dot(w2_ref[...], h.astype(jnp.bfloat16), preferred_element_type=jnp.float32)
               + b2_ref[...])                                    # (1, CHUNK)

        # distance = softplus(mlp_out + 1.0)   (F.softplus, beta=1, threshold=20)
        z = out + 1.0
        o_ref[:, lanes] = jnp.where(z > 20.0, z, jnp.log1p(jnp.exp(jnp.minimum(z, 20.0))))


def _run_pallas(geom, cf0, cf1, params, n_pad, tile):
    grid = (n_pad // tile,)

    def stream(rows):
        return pl.BlockSpec((rows, tile), lambda i: (0, i))

    def w_spec(shape):
        return pl.BlockSpec(shape, lambda i: (0, 0))

    # Default double buffering is enough once tiles are >=1024 points (steps are
    # bandwidth-bound, not latency-bound); deeper pl.Buffered(3) was not needed.
    out = pl.pallas_call(
        geo_kernel,
        out_shape=jax.ShapeDtypeStruct((1, n_pad), jnp.float32),
        grid=grid,
        in_specs=[
            w_spec((N_LEVELS, 1)),                 # per-level scales (16, 1) f32
            stream(GEOM_ROWS),                     # geom (6, N) f32: dirs + dir_scaled
            stream(CF_ROWS),                       # cf feature-0 (128, N) bf16
            stream(CF_ROWS),                       # cf feature-1 (128, N) bf16
            w_spec((N_NEURONS, GEOM_ROWS)),        # W0 geom part (64, 6) bf16 (cols 3..5 zero)
            w_spec((N_NEURONS, N_LEVELS)),         # W0 feature-0 part (64, 16) bf16
            w_spec((N_NEURONS, N_LEVELS)),         # W0 feature-1 part (64, 16) bf16
            w_spec((N_NEURONS, 1)),                # b0 (64, 1) f32
            w_spec((N_NEURONS, N_NEURONS)),        # W1^T (64, 64) bf16
            w_spec((N_NEURONS, 1)),                # b1 (64, 1) f32
            w_spec((1, N_NEURONS)),                # w2^T (1, 64) bf16
            w_spec((1, 1)),                        # b2 (1, 1) f32
        ],
        out_specs=pl.BlockSpec((1, tile), lambda i: (0, i)),     # lane-dense output
        compiler_params=pltpu.CompilerParams(
            dimension_semantics=("parallel",),     # shards point tiles across TCs (v7x)
            vmem_limit_bytes=32 * 1024 * 1024,     # ample headroom; usage is ~2-3 MiB
        ),
    )(params["scales"], geom, cf0, cf1,
      params["w0gT"], params["w0f0T"], params["w0f1T"], params["b0"],
      params["w1T"], params["b1"], params["w2T"], params["b2"])
    return out[0]


def _choose_tile(n):
    # Big tiles amortize the ~0.35 us per-grid-step overhead; cap for small batches so
    # the 'parallel' grid axis still has >=2 steps (keeps both v7x TensorCores busy).
    n_chunks = -(-n // CHUNK)
    tile_chunks = max(1, min(TILE_MAX // CHUNK, -(-n_chunks // 2)))
    return tile_chunks * CHUNK


# ------------------------- hash-grid gather (plain-JAX glue) ----------------------
# TODO(synk): the data-dependent gather into the 16 x 2^19 x 2 hash table (64 MiB) has no
# clean Pallas/TPU equivalent at this size; it stays in XLA.  All other encoding math
# (smoothstep trilinear blend) happens inside the kernel.
def hash_grid_gather(dir_scaled, table0, table1):
    scales = jnp.asarray(_LEVEL_SCALES)                             # (L,)
    # mul-then-add in f32: must match the in-kernel frac recomputation on dir_scaled.
    pos = dir_scaled[None, :, :] * scales[:, None, None] + 0.5      # (L, N, 3)
    grid = jnp.floor(pos).astype(jnp.uint32)                        # (L, N, 3)

    # Corner coordinates built directly in (corner, level, point) order so the gather
    # output lands in the kernel's (8*L, N) row layout with no materialized transpose.
    offsets = jnp.asarray(
        [[(c >> 0) & 1, (c >> 1) & 1, (c >> 2) & 1] for c in range(8)], jnp.uint32)
    coords = grid[None, :, :, :] + offsets[:, None, None, :]        # (8, L, N, 3)
    cx, cy, cz = coords[..., 0], coords[..., 1], coords[..., 2]     # (8, L, N)

    res_u = jnp.asarray(_LEVEL_RES.astype(np.uint32))[None, :, None]
    dense_idx = (cx + cy * res_u + cz * res_u * res_u) % jnp.uint32(TABLE_SIZE)
    hash_idx = (cx
                ^ (cy * jnp.uint32(2654435761))
                ^ (cz * jnp.uint32(805459861))) & jnp.uint32(TABLE_SIZE - 1)
    use_dense = jnp.asarray(
        (_LEVEL_RES.astype(np.int64) ** 3) <= TABLE_SIZE)[None, :, None]
    idx = jnp.where(use_dense, dense_idx, hash_idx).astype(jnp.int32)   # (8, L, N)

    level_off = (jnp.arange(N_LEVELS, dtype=jnp.int32) * TABLE_SIZE)[None, :, None]
    flat_idx = idx + level_off                                       # (8, L, N)

    n = dir_scaled.shape[0]
    # One gather per feature channel; bf16 cast fuses into the gather output write.
    # TODO(synk): bf16 table features halve the HBM round trip; validate precision if
    # loading a trained fp32 checkpoint (tcnn itself stores fp16 grid params).
    cf0 = jnp.take(table0, flat_idx, axis=0).astype(jnp.bfloat16).reshape(CF_ROWS, n)
    cf1 = jnp.take(table1, flat_idx, axis=0).astype(jnp.bfloat16).reshape(CF_ROWS, n)
    return cf0, cf1


# ------------------------------- forward wrapper ----------------------------------
def geometric_field_forward(directions, params):
    dirs = directions.astype(jnp.float32)
    n = dirs.shape[0]
    tile = _choose_tile(n)
    n_pad = (-(-n // tile)) * tile                       # pad to tile multiple
    dirs_p = jnp.pad(dirs, ((0, n_pad - n), (0, 0)))
    dir_scaled = dirs_p * 0.49 + 0.49
    # NOTE: the PyTorch forward computes `selector` but never uses it (dead code) —
    # it does not affect the returned distance, so it is omitted here.
    cf0, cf1 = hash_grid_gather(dir_scaled, params["table0"], params["table1"])
    geom = jnp.concatenate([dirs_p.T, dir_scaled.T], axis=0)        # (6, n_pad) f32
    out = _run_pallas(geom, cf0, cf1, params, n_pad, tile)
    return out[:n]


# ------------------------------ deterministic init --------------------------------
def init_params(key):
    ks = jax.random.split(key, 5)
    # tcnn HashGrid default init: U(-1e-4, 1e-4); stored pre-split by feature channel so
    # no runtime split of the 64 MiB table is needed.
    table0 = jax.random.uniform(ks[0], (N_LEVELS * TABLE_SIZE,), jnp.float32, -1e-4, 1e-4)
    table1 = jax.random.uniform(ks[1], (N_LEVELS * TABLE_SIZE,), jnp.float32, -1e-4, 1e-4)
    # VanillaMLP(35 -> 64 -> 64 -> 1); sphere_init / weight_norm only change the *values*
    # of the init, not forward semantics — deterministic geometric-style init here.
    w0 = jax.random.normal(ks[2], (DIM_IN, N_NEURONS), jnp.float32) * np.sqrt(2.0 / N_NEURONS)
    w1 = jax.random.normal(ks[3], (N_NEURONS, N_NEURONS), jnp.float32) * np.sqrt(2.0 / N_NEURONS)
    w2 = jax.random.normal(ks[4], (N_NEURONS, 1), jnp.float32) * (np.sqrt(np.pi) / np.sqrt(N_NEURONS))
    # Input row order of w0: [dirs(3), level0_feat0, level0_feat1, level1_feat0, ...].
    # Kernel convention: geom part (dirs cols + zero cols for dir_scaled) and two
    # per-feature-channel blocks whose columns are levels 0..15.
    w0gT = jnp.zeros((N_NEURONS, GEOM_ROWS), jnp.float32).at[:, :3].set(w0[:3].T)
    return dict(
        scales=jnp.asarray(_LEVEL_SCALES).reshape(N_LEVELS, 1),
        table0=table0, table1=table1,
        w0gT=w0gT.astype(jnp.bfloat16),                   # (64, 6)
        w0f0T=w0[3::2].T.astype(jnp.bfloat16),            # (64, 16) feature-0 levels
        w0f1T=w0[4::2].T.astype(jnp.bfloat16),            # (64, 16) feature-1 levels
        b0=jnp.zeros((N_NEURONS, 1), jnp.float32),
        w1T=w1.T.astype(jnp.bfloat16),                    # (64, 64)
        b1=jnp.zeros((N_NEURONS, 1), jnp.float32),
        w2T=w2.T.astype(jnp.bfloat16),                    # (1, 64) — layer-2 MXU dot
        b2=jnp.full((1, 1), -0.5, jnp.float32),           # sphere_init output bias (-radius)
    )


if __name__ == "__main__":
    key = jax.random.PRNGKey(0)
    pkey, dkey = jax.random.split(key)
    params = init_params(pkey)

    N = 384  # small, non-multiple of the tile -> exercises padding, 2 grid steps, chunk loop
    d = jax.random.normal(dkey, (N, 3), jnp.float32)
    directions = d / jnp.linalg.norm(d, axis=-1, keepdims=True)   # unit view directions

    fwd = jax.jit(geometric_field_forward)
    distance = fwd(directions, params)
    distance = jax.block_until_ready(distance)
    assert distance.shape == (N,)
    assert bool(jnp.all(jnp.isfinite(distance)))
    assert bool(jnp.all(distance > 0.0))   # softplus output is positive
    print("KERNEL_OK")
</pallas_src>

<mosaic_0001>
module attributes {stable_mosaic.version = 11 : i64} {
  func.func @geo_kernel(%arg0: i32, %arg1: memref<16x1xf32, #tpu.memory_space<vmem>>, %arg2: memref<6x256xf32, #tpu.memory_space<vmem>>, %arg3: memref<128x256xbf16, #tpu.memory_space<vmem>>, %arg4: memref<128x256xbf16, #tpu.memory_space<vmem>>, %arg5: memref<64x6xbf16, #tpu.memory_space<vmem>>, %arg6: memref<64x16xbf16, #tpu.memory_space<vmem>>, %arg7: memref<64x16xbf16, #tpu.memory_space<vmem>>, %arg8: memref<64x1xf32, #tpu.memory_space<vmem>>, %arg9: memref<64x64xbf16, #tpu.memory_space<vmem>>, %arg10: memref<64x1xf32, #tpu.memory_space<vmem>>, %arg11: memref<1x64xbf16, #tpu.memory_space<vmem>>, %arg12: memref<1x1xf32, #tpu.memory_space<vmem>>, %arg13: memref<1x256xf32, #tpu.memory_space<vmem>>) attributes {dimension_semantics = [#tpu.dimension_semantics<parallel>], iteration_bounds = array<i64: 2>, scalar_prefetch = 0 : i64, scratch_operands = 0 : i64, tpu.core_type = #tpu.core_type<tc>, window_params = [{pipeline_mode = #tpu.pipeline_mode<synchronous>, transform_indices = @transform_0, window_bounds = array<i64: 16, 1>}, {transform_indices = @transform_1, window_bounds = array<i64: 6, 256>}, {transform_indices = @transform_2, window_bounds = array<i64: 128, 256>}, {transform_indices = @transform_3, window_bounds = array<i64: 128, 256>}, {pipeline_mode = #tpu.pipeline_mode<synchronous>, transform_indices = @transform_4, window_bounds = array<i64: 64, 6>}, {pipeline_mode = #tpu.pipeline_mode<synchronous>, transform_indices = @transform_5, window_bounds = array<i64: 64, 16>}, {pipeline_mode = #tpu.pipeline_mode<synchronous>, transform_indices = @transform_6, window_bounds = array<i64: 64, 16>}, {pipeline_mode = #tpu.pipeline_mode<synchronous>, transform_indices = @transform_7, window_bounds = array<i64: 64, 1>}, {pipeline_mode = #tpu.pipeline_mode<synchronous>, transform_indices = @transform_8, window_bounds = array<i64: 64, 64>}, {pipeline_mode = #tpu.pipeline_mode<synchronous>, transform_indices = @transform_9, window_bounds = array<i64: 64, 1>}, {pipeline_mode = #tpu.pipeline_mode<synchronous>, transform_indices = @transform_10, window_bounds = array<i64: 1, 64>}, {pipeline_mode = #tpu.pipeline_mode<synchronous>, transform_indices = @transform_11, window_bounds = array<i64: 1, 1>}, {transform_indices = @transform_12, window_bounds = array<i64: 1, 256>}]} {
    %c0 = arith.constant 0 : index
    %c0_0 = arith.constant 0 : index
    %0 = vector.load %arg1[%c0, %c0_0] : memref<16x1xf32, #tpu.memory_space<vmem>>, vector<16x1xf32>
    %c0_i32 = arith.constant 0 : i32
    %c1_i32 = arith.constant 1 : i32
    %1 = arith.muli %c0_i32, %c1_i32 : i32
    %c0_i32_1 = arith.constant 0 : i32
    %2 = arith.addi %c0_i32_1, %1 : i32
    %c256_i32 = arith.constant 256 : i32
    %3 = arith.muli %2, %c256_i32 : i32
    %4 = tpu.assume_multiple %3, 256 : i32
    %c3 = arith.constant 3 : index
    %5 = arith.index_cast %4 : i32 to index
    %6 = vector.load %arg2[%c3, %5] : memref<6x256xf32, #tpu.memory_space<vmem>>, vector<1x256xf32>
    %7 = vector.broadcast %6 : vector<1x256xf32> to vector<16x256xf32>
    %8 = vector.broadcast %0 : vector<16x1xf32> to vector<16x256xf32>
    %9 = arith.mulf %7, %8 : vector<16x256xf32>
    %cst = arith.constant 5.000000e-01 : f32
    %10 = vector.broadcast %cst : f32 to vector<16x256xf32>
    %11 = arith.addf %9, %10 : vector<16x256xf32>
    %12 = math.floor %11 : vector<16x256xf32>
    %13 = arith.subf %11, %12 : vector<16x256xf32>
    %14 = arith.mulf %13, %13 : vector<16x256xf32>
    %cst_2 = arith.constant 2.000000e+00 : f32
    %15 = vector.broadcast %cst_2 : f32 to vector<16x256xf32>
    %16 = arith.mulf %15, %13 : vector<16x256xf32>
    %cst_3 = arith.constant 3.000000e+00 : f32
    %17 = vector.broadcast %cst_3 : f32 to vector<16x256xf32>
    %18 = arith.subf %17, %16 : vector<16x256xf32>
    %19 = arith.mulf %14, %18 : vector<16x256xf32>
    %c4 = arith.constant 4 : index
    %20 = arith.index_cast %4 : i32 to index
    %21 = vector.load %arg2[%c4, %20] : memref<6x256xf32, #tpu.memory_space<vmem>>, vector<1x256xf32>
    %22 = vector.broadcast %21 : vector<1x256xf32> to vector<16x256xf32>
    %23 = vector.broadcast %0 : vector<16x1xf32> to vector<16x256xf32>
    %24 = arith.mulf %22, %23 : vector<16x256xf32>
    %cst_4 = arith.constant 5.000000e-01 : f32
    %25 = vector.broadcast %cst_4 : f32 to vector<16x256xf32>
    %26 = arith.addf %24, %25 : vector<16x256xf32>
    %27 = math.floor %26 : vector<16x256xf32>
    %28 = arith.subf %26, %27 : vector<16x256xf32>
    %29 = arith.mulf %28, %28 : vector<16x256xf32>
    %cst_5 = arith.constant 2.000000e+00 : f32
    %30 = vector.broadcast %cst_5 : f32 to vector<16x256xf32>
    %31 = arith.mulf %30, %28 : vector<16x256xf32>
    %cst_6 = arith.constant 3.000000e+00 : f32
    %32 = vector.broadcast %cst_6 : f32 to vector<16x256xf32>
    %33 = arith.subf %32, %31 : vector<16x256xf32>
    %34 = arith.mulf %29, %33 : vector<16x256xf32>
    %c5 = arith.constant 5 : index
    %35 = arith.index_cast %4 : i32 to index
    %36 = vector.load %arg2[%c5, %35] : memref<6x256xf32, #tpu.memory_space<vmem>>, vector<1x256xf32>
    %37 = vector.broadcast %36 : vector<1x256xf32> to vector<16x256xf32>
    %38 = vector.broadcast %0 : vector<16x1xf32> to vector<16x256xf32>
    %39 = arith.mulf %37, %38 : vector<16x256xf32>
    %cst_7 = arith.constant 5.000000e-01 : f32
    %40 = vector.broadcast %cst_7 : f32 to vector<16x256xf32>
    %41 = arith.addf %39, %40 : vector<16x256xf32>
    %42 = math.floor %41 : vector<16x256xf32>
    %43 = arith.subf %41, %42 : vector<16x256xf32>
    %44 = arith.mulf %43, %43 : vector<16x256xf32>
    %cst_8 = arith.constant 2.000000e+00 : f32
    %45 = vector.broadcast %cst_8 : f32 to vector<16x256xf32>
    %46 = arith.mulf %45, %43 : vector<16x256xf32>
    %cst_9 = arith.constant 3.000000e+00 : f32
    %47 = vector.broadcast %cst_9 : f32 to vector<16x256xf32>
    %48 = arith.subf %47, %46 : vector<16x256xf32>
    %49 = arith.mulf %44, %48 : vector<16x256xf32>
    %c0_10 = arith.constant 0 : index
    %50 = arith.index_cast %4 : i32 to index
    %51 = vector.load %arg3[%c0_10, %50] : memref<128x256xbf16, #tpu.memory_space<vmem>>, vector<16x256xbf16>
    %52 = arith.extf %51 : vector<16x256xbf16> to vector<16x256xf32>
    %c16 = arith.constant 16 : index
    %53 = arith.index_cast %4 : i32 to index
    %54 = vector.load %arg3[%c16, %53] : memref<128x256xbf16, #tpu.memory_space<vmem>>, vector<16x256xbf16>
    %55 = arith.extf %54 : vector<16x256xbf16> to vector<16x256xf32>
    %56 = arith.subf %55, %52 : vector<16x256xf32>
    %57 = arith.mulf %19, %56 : vector<16x256xf32>
    %58 = arith.addf %52, %57 : vector<16x256xf32>
    %c32 = arith.constant 32 : index
    %59 = arith.index_cast %4 : i32 to index
    %60 = vector.load %arg3[%c32, %59] : memref<128x256xbf16, #tpu.memory_space<vmem>>, vector<16x256xbf16>
    %61 = arith.extf %60 : vector<16x256xbf16> to vector<16x256xf32>
    %c48 = arith.constant 48 : index
    %62 = arith.index_cast %4 : i32 to index
    %63 = vector.load %arg3[%c48, %62] : memref<128x256xbf16, #tpu.memory_space<vmem>>, vector<16x256xbf16>
    %64 = arith.extf %63 : vector<16x256xbf16> to vector<16x256xf32>
    %65 = arith.subf %64, %61 : vector<16x256xf32>
    %66 = arith.mulf %19, %65 : vector<16x256xf32>
    %67 = arith.addf %61, %66 : vector<16x256xf32>
    %c64 = arith.constant 64 : index
    %68 = arith.index_cast %4 : i32 to index
    %69 = vector.load %arg3[%c64, %68] : memref<128x256xbf16, #tpu.memory_space<vmem>>, vector<16x256xbf16>
    %70 = arith.extf %69 : vector<16x256xbf16> to vector<16x256xf32>
    %c80 = arith.constant 80 : index
    %71 = arith.index_cast %4 : i32 to index
    %72 = vector.load %arg3[%c80, %71] : memref<128x256xbf16, #tpu.memory_space<vmem>>, vector<16x256xbf16>
    %73 = arith.extf %72 : vector<16x256xbf16> to vector<16x256xf32>
    %74 = arith.subf %73, %70 : vector<16x256xf32>
    %75 = arith.mulf %19, %74 : vector<16x256xf32>
    %76 = arith.addf %70, %75 : vector<16x256xf32>
    %c96 = arith.constant 96 : index
    %77 = arith.index_cast %4 : i32 to index
    %78 = vector.load %arg3[%c96, %77] : memref<128x256xbf16, #tpu.memory_space<vmem>>, vector<16x256xbf16>
    %79 = arith.extf %78 : vector<16x256xbf16> to vector<16x256xf32>
    %c112 = arith.constant 112 : index
    %80 = arith.index_cast %4 : i32 to index
    %81 = vector.load %arg3[%c112, %80] : memref<128x256xbf16, #tpu.memory_space<vmem>>, vector<16x256xbf16>
    %82 = arith.extf %81 : vector<16x256xbf16> to vector<16x256xf32>
    %83 = arith.subf %82, %79 : vector<16x256xf32>
    %84 = arith.mulf %19, %83 : vector<16x256xf32>
    %85 = arith.addf %79, %84 : vector<16x256xf32>
    %86 = arith.subf %67, %58 : vector<16x256xf32>
    %87 = arith.mulf %34, %86 : vector<16x256xf32>
    %88 = arith.addf %58, %87 : vector<16x256xf32>
    %89 = arith.subf %85, %76 : vector<16x256xf32>
    %90 = arith.mulf %34, %89 : vector<16x256xf32>
    %91 = arith.addf %76, %90 : vector<16x256xf32>
    %92 = arith.subf %91, %88 : vector<16x256xf32>
    %93 = arith.mulf %49, %92 : vector<16x256xf32>
    %94 = arith.addf %88, %93 : vector<16x256xf32>
    %95 = arith.truncf %94 : vector<16x256xf32> to vector<16x256xbf16>
    %c0_11 = arith.constant 0 : index
    %96 = arith.index_cast %4 : i32 to index
    %97 = vector.load %arg4[%c0_11, %96] : memref<128x256xbf16, #tpu.memory_space<vmem>>, vector<16x256xbf16>
    %98 = arith.extf %97 : vector<16x256xbf16> to vector<16x256xf32>
    %c16_12 = arith.constant 16 : index
    %99 = arith.index_cast %4 : i32 to index
    %100 = vector.load %arg4[%c16_12, %99] : memref<128x256xbf16, #tpu.memory_space<vmem>>, vector<16x256xbf16>
    %101 = arith.extf %100 : vector<16x256xbf16> to vector<16x256xf32>
    %102 = arith.subf %101, %98 : vector<16x256xf32>
    %103 = arith.mulf %19, %102 : vector<16x256xf32>
    %104 = arith.addf %98, %103 : vector<16x256xf32>
    %c32_13 = arith.constant 32 : index
    %105 = arith.index_cast %4 : i32 to index
    %106 = vector.load %arg4[%c32_13, %105] : memref<128x256xbf16, #tpu.memory_space<vmem>>, vector<16x256xbf16>
    %107 = arith.extf %106 : vector<16x256xbf16> to vector<16x256xf32>
    %c48_14 = arith.constant 48 : index
    %108 = arith.index_cast %4 : i32 to index
    %109 = vector.load %arg4[%c48_14, %108] : memref<128x256xbf16, #tpu.memory_space<vmem>>, vector<16x256xbf16>
    %110 = arith.extf %109 : vector<16x256xbf16> to vector<16x256xf32>
    %111 = arith.subf %110, %107 : vector<16x256xf32>
    %112 = arith.mulf %19, %111 : vector<16x256xf32>
    %113 = arith.addf %107, %112 : vector<16x256xf32>
    %c64_15 = arith.constant 64 : index
    %114 = arith.index_cast %4 : i32 to index
    %115 = vector.load %arg4[%c64_15, %114] : memref<128x256xbf16, #tpu.memory_space<vmem>>, vector<16x256xbf16>
    %116 = arith.extf %115 : vector<16x256xbf16> to vector<16x256xf32>
    %c80_16 = arith.constant 80 : index
    %117 = arith.index_cast %4 : i32 to index
    %118 = vector.load %arg4[%c80_16, %117] : memref<128x256xbf16, #tpu.memory_space<vmem>>, vector<16x256xbf16>
    %119 = arith.extf %118 : vector<16x256xbf16> to vector<16x256xf32>
    %120 = arith.subf %119, %116 : vector<16x256xf32>
    %121 = arith.mulf %19, %120 : vector<16x256xf32>
    %122 = arith.addf %116, %121 : vector<16x256xf32>
    %c96_17 = arith.constant 96 : index
    %123 = arith.index_cast %4 : i32 to index
    %124 = vector.load %arg4[%c96_17, %123] : memref<128x256xbf16, #tpu.memory_space<vmem>>, vector<16x256xbf16>
    %125 = arith.extf %124 : vector<16x256xbf16> to vector<16x256xf32>
    %c112_18 = arith.constant 112 : index
    %126 = arith.index_cast %4 : i32 to index
    %127 = vector.load %arg4[%c112_18, %126] : memref<128x256xbf16, #tpu.memory_space<vmem>>, vector<16x256xbf16>
    %128 = arith.extf %127 : vector<16x256xbf16> to vector<16x256xf32>
    %129 = arith.subf %128, %125 : vector<16x256xf32>
    %130 = arith.mulf %19, %129 : vector<16x256xf32>
    %131 = arith.addf %125, %130 : vector<16x256xf32>
    %132 = arith.subf %113, %104 : vector<16x256xf32>
    %133 = arith.mulf %34, %132 : vector<16x256xf32>
    %134 = arith.addf %104, %133 : vector<16x256xf32>
    %135 = arith.subf %131, %122 : vector<16x256xf32>
    %136 = arith.mulf %34, %135 : vector<16x256xf32>
    %137 = arith.addf %122, %136 : vector<16x256xf32>
    %138 = arith.subf %137, %134 : vector<16x256xf32>
    %139 = arith.mulf %49, %138 : vector<16x256xf32>
    %140 = arith.addf %134, %139 : vector<16x256xf32>
    %141 = arith.truncf %140 : vector<16x256xf32> to vector<16x256xbf16>
    %c0_19 = arith.constant 0 : index
    %142 = arith.index_cast %4 : i32 to index
    %143 = vector.load %arg2[%c0_19, %142] : memref<6x256xf32, #tpu.memory_space<vmem>>, vector<6x256xf32>
    %144 = arith.truncf %143 : vector<6x256xf32> to vector<6x256xbf16>
    %c0_20 = arith.constant 0 : index
    %c0_21 = arith.constant 0 : index
    %145 = vector.load %arg5[%c0_20, %c0_21] : memref<64x6xbf16, #tpu.memory_space<vmem>>, vector<64x6xbf16>
    %cst_22 = arith.constant dense<0.000000e+00> : vector<64x256xf32>
    %146 = tpu.matmul %145, %144, %cst_22 {dimension_numbers = #tpu.dot_dimension_numbers<[1], [0], [0], [1], [0, 0, 1, 1], [], []>} : vector<64x6xbf16>, vector<6x256xbf16>, vector<64x256xf32> -> vector<64x256xf32>
    %c0_23 = arith.constant 0 : index
    %c0_24 = arith.constant 0 : index
    %147 = vector.load %arg6[%c0_23, %c0_24] : memref<64x16xbf16, #tpu.memory_space<vmem>>, vector<64x16xbf16>
    %cst_25 = arith.constant dense<0.000000e+00> : vector<64x256xf32>
    %148 = tpu.matmul %147, %95, %cst_25 {dimension_numbers = #tpu.dot_dimension_numbers<[1], [0], [0], [1], [0, 0, 1, 1], [], []>} : vector<64x16xbf16>, vector<16x256xbf16>, vector<64x256xf32> -> vector<64x256xf32>
    %149 = arith.addf %146, %148 : vector<64x256xf32>
    %c0_26 = arith.constant 0 : index
    %c0_27 = arith.constant 0 : index
    %150 = vector.load %arg7[%c0_26, %c0_27] : memref<64x16xbf16, #tpu.memory_space<vmem>>, vector<64x16xbf16>
    %cst_28 = arith.constant dense<0.000000e+00> : vector<64x256xf32>
    %151 = tpu.matmul %150, %141, %cst_28 {dimension_numbers = #tpu.dot_dimension_numbers<[1], [0], [0], [1], [0, 0, 1, 1], [], []>} : vector<64x16xbf16>, vector<16x256xbf16>, vector<64x256xf32> -> vector<64x256xf32>
    %152 = arith.addf %149, %151 : vector<64x256xf32>
    %c0_29 = arith.constant 0 : index
    %c0_30 = arith.constant 0 : index
    %153 = vector.load %arg8[%c0_29, %c0_30] : memref<64x1xf32, #tpu.memory_space<vmem>>, vector<64x1xf32>
    %154 = vector.broadcast %153 : vector<64x1xf32> to vector<64x256xf32>
    %155 = arith.addf %152, %154 : vector<64x256xf32>
    %cst_31 = arith.constant 1.000000e+02 : f32
    %156 = vector.broadcast %cst_31 : f32 to vector<64x256xf32>
    %157 = arith.mulf %156, %155 : vector<64x256xf32>
    %cst_32 = arith.constant 2.000000e+01 : f32
    %158 = vector.broadcast %cst_32 : f32 to vector<64x256xf32>
    %159 = arith.cmpf ogt, %157, %158 : vector<64x256xf32>
    %cst_33 = arith.constant 2.000000e+01 : f32
    %160 = vector.broadcast %cst_33 : f32 to vector<64x256xf32>
    %161 = arith.minimumf %157, %160 : vector<64x256xf32>
    %162 = math.exp %161 : vector<64x256xf32>
    %163 = math.log1p %162 : vector<64x256xf32>
    %cst_34 = arith.constant 1.000000e+02 : f32
    %164 = vector.broadcast %cst_34 : f32 to vector<64x256xf32>
    %165 = arith.divf %163, %164 : vector<64x256xf32>
    %166 = arith.select %159, %155, %165 : vector<64x256xi1>, vector<64x256xf32>
    %c0_35 = arith.constant 0 : index
    %c0_36 = arith.constant 0 : index
    %167 = vector.load %arg9[%c0_35, %c0_36] : memref<64x64xbf16, #tpu.memory_space<vmem>>, vector<64x64xbf16>
    %168 = arith.truncf %166 : vector<64x256xf32> to vector<64x256xbf16>
    %cst_37 = arith.constant dense<0.000000e+00> : vector<64x256xf32>
    %169 = tpu.matmul %167, %168, %cst_37 {dimension_numbers = #tpu.dot_dimension_numbers<[1], [0], [0], [1], [0, 0, 1, 1], [], []>} : vector<64x64xbf16>, vector<64x256xbf16>, vector<64x256xf32> -> vector<64x256xf32>
    %c0_38 = arith.constant 0 : index
    %c0_39 = arith.constant 0 : index
    %170 = vector.load %arg10[%c0_38, %c0_39] : memref<64x1xf32, #tpu.memory_space<vmem>>, vector<64x1xf32>
    %171 = vector.broadcast %170 : vector<64x1xf32> to vector<64x256xf32>
    %172 = arith.addf %169, %171 : vector<64x256xf32>
    %cst_40 = arith.constant 1.000000e+02 : f32
    %173 = vector.broadcast %cst_40 : f32 to vector<64x256xf32>
    %174 = arith.mulf %173, %172 : vector<64x256xf32>
    %cst_41 = arith.constant 2.000000e+01 : f32
    %175 = vector.broadcast %cst_41 : f32 to vector<64x256xf32>
    %176 = arith.cmpf ogt, %174, %175 : vector<64x256xf32>
    %cst_42 = arith.constant 2.000000e+01 : f32
    %177 = vector.broadcast %cst_42 : f32 to vector<64x256xf32>
    %178 = arith.minimumf %174, %177 : vector<64x256xf32>
    %179 = math.exp %178 : vector<64x256xf32>
    %180 = math.log1p %179 : vector<64x256xf32>
    %cst_43 = arith.constant 1.000000e+02 : f32
    %181 = vector.broadcast %cst_43 : f32 to vector<64x256xf32>
    %182 = arith.divf %180, %181 : vector<64x256xf32>
    %183 = arith.select %176, %172, %182 : vector<64x256xi1>, vector<64x256xf32>
    %c0_44 = arith.constant 0 : index
    %c0_45 = arith.constant 0 : index
    %184 = vector.load %arg11[%c0_44, %c0_45] : memref<1x64xbf16, #tpu.memory_space<vmem>>, vector<1x64xbf16>
    %185 = arith.truncf %183 : vector<64x256xf32> to vector<64x256xbf16>
    %cst_46 = arith.constant dense<0.000000e+00> : vector<1x256xf32>
    %186 = tpu.matmul %184, %185, %cst_46 {dimension_numbers = #tpu.dot_dimension_numbers<[1], [0], [0], [1], [0, 0, 1, 1], [], []>} : vector<1x64xbf16>, vector<64x256xbf16>, vector<1x256xf32> -> vector<1x256xf32>
    %c0_47 = arith.constant 0 : index
    %c0_48 = arith.constant 0 : index
    %187 = vector.load %arg12[%c0_47, %c0_48] : memref<1x1xf32, #tpu.memory_space<vmem>>, vector<1x1xf32>
    %188 = vector.broadcast %187 : vector<1x1xf32> to vector<1x256xf32>
    %189 = arith.addf %186, %188 : vector<1x256xf32>
    %cst_49 = arith.constant 1.000000e+00 : f32
    %190 = vector.broadcast %cst_49 : f32 to vector<1x256xf32>
    %191 = arith.addf %189, %190 : vector<1x256xf32>
    %cst_50 = arith.constant 2.000000e+01 : f32
    %192 = vector.broadcast %cst_50 : f32 to vector<1x256xf32>
    %193 = arith.cmpf ogt, %191, %192 : vector<1x256xf32>
    %cst_51 = arith.constant 2.000000e+01 : f32
    %194 = vector.broadcast %cst_51 : f32 to vector<1x256xf32>
    %195 = arith.minimumf %191, %194 : vector<1x256xf32>
    %196 = math.exp %195 : vector<1x256xf32>
    %197 = math.log1p %196 : vector<1x256xf32>
    %198 = arith.select %193, %191, %197 : vector<1x256xi1>, vector<1x256xf32>
    %c0_52 = arith.constant 0 : index
    %199 = arith.index_cast %4 : i32 to index
    %200 = vector.load %arg13[%c0_52, %199] : memref<1x256xf32, #tpu.memory_space<vmem>>, vector<1x256xf32>
    tpu.vector_store %arg13[%c0_52, %199], %198 {strides = array<i32>} : memref<1x256xf32, #tpu.memory_space<vmem>>, vector<1x256xf32>,
    %c1_i32_53 = arith.constant 1 : i32
    return
  }
  func.func @transform_0(%arg0: i32) -> (i32, i32) {
    %c0_i32 = arith.constant 0 : i32
    %c0_i32_0 = arith.constant 0 : i32
    %c0_i32_1 = arith.constant 0 : i32
    return %c0_i32, %c0_i32_0 : i32, i32
  }
  func.func @transform_1(%arg0: i32) -> (i32, i32) {
    %c0_i32 = arith.constant 0 : i32
    %c0_i32_0 = arith.constant 0 : i32
    return %c0_i32, %arg0 : i32, i32
  }
  func.func @transform_2(%arg0: i32) -> (i32, i32) {
    %c0_i32 = arith.constant 0 : i32
    %c0_i32_0 = arith.constant 0 : i32
    return %c0_i32, %arg0 : i32, i32
  }
  func.func @transform_3(%arg0: i32) -> (i32, i32) {
    %c0_i32 = arith.constant 0 : i32
    %c0_i32_0 = arith.constant 0 : i32
    return %c0_i32, %arg0 : i32, i32
  }
  func.func @transform_4(%arg0: i32) -> (i32, i32) {
    %c0_i32 = arith.constant 0 : i32
    %c0_i32_0 = arith.constant 0 : i32
    %c0_i32_1 = arith.constant 0 : i32
    return %c0_i32, %c0_i32_0 : i32, i32
  }
  func.func @transform_5(%arg0: i32) -> (i32, i32) {
    %c0_i32 = arith.constant 0 : i32
    %c0_i32_0 = arith.constant 0 : i32
    %c0_i32_1 = arith.constant 0 : i32
    return %c0_i32, %c0_i32_0 : i32, i32
  }
  func.func @transform_6(%arg0: i32) -> (i32, i32) {
    %c0_i32 = arith.constant 0 : i32
    %c0_i32_0 = arith.constant 0 : i32
    %c0_i32_1 = arith.constant 0 : i32
    return %c0_i32, %c0_i32_0 : i32, i32
  }
  func.func @transform_7(%arg0: i32) -> (i32, i32) {
    %c0_i32 = arith.constant 0 : i32
    %c0_i32_0 = arith.constant 0 : i32
    %c0_i32_1 = arith.constant 0 : i32
    return %c0_i32, %c0_i32_0 : i32, i32
  }
  func.func @transform_8(%arg0: i32) -> (i32, i32) {
    %c0_i32 = arith.constant 0 : i32
    %c0_i32_0 = arith.constant 0 : i32
    %c0_i32_1 = arith.constant 0 : i32
    return %c0_i32, %c0_i32_0 : i32, i32
  }
  func.func @transform_9(%arg0: i32) -> (i32, i32) {
    %c0_i32 = arith.constant 0 : i32
    %c0_i32_0 = arith.constant 0 : i32
    %c0_i32_1 = arith.constant 0 : i32
    return %c0_i32, %c0_i32_0 : i32, i32
  }
  func.func @transform_10(%arg0: i32) -> (i32, i32) {
    %c0_i32 = arith.constant 0 : i32
    %c0_i32_0 = arith.constant 0 : i32
    %c0_i32_1 = arith.constant 0 : i32
    return %c0_i32, %c0_i32_0 : i32, i32
  }
  func.func @transform_11(%arg0: i32) -> (i32, i32) {
    %c0_i32 = arith.constant 0 : i32
    %c0_i32_0 = arith.constant 0 : i32
    %c0_i32_1 = arith.constant 0 : i32
    return %c0_i32, %c0_i32_0 : i32, i32
  }
  func.func @transform_12(%arg0: i32) -> (i32, i32) {
    %c0_i32 = arith.constant 0 : i32
    %c0_i32_0 = arith.constant 0 : i32
    return %c0_i32, %arg0 : i32, i32
  }
}

</mosaic_0001>

<bundles_post_ra>
// kernel: geometric_field_forward.1
= control target key start
LH: loop header
LB: loop body
LE: loop exit
PB: predicated region body
PF: predicated region fallthrough
CT: control target
= control target key end

     0   :  { %s5047_s0 = inlined_call_operand.hbm [shape: f32[16,1], index: 0, kind: input, shape index: {}]   ;;  %s5048_s1 = inlined_call_operand.hbm [shape: f32[6,512], index: 1, kind: input, shape index: {}]   ;;  %s5049_s2 = inlined_call_operand.hbm [shape: bf16[128,512], index: 2, kind: input, shape index: {}]   ;;  %s5050_s3 = inlined_call_operand.hbm [shape: bf16[128,512], index: 3, kind: input, shape index: {}]   ;;  %s5051_s4 = inlined_call_operand.hbm [shape: bf16[64,6], index: 4, kind: input, shape index: {}]   ;;  %s5052_s5 = inlined_call_operand.hbm [shape: bf16[64,16], index: 5, kind: input, shape index: {}]   ;;  %s5053_s6 = inlined_call_operand.hbm [shape: bf16[64,16], index: 6, kind: input, shape index: {}]   ;;  %s5054_s7 = inlined_call_operand.hbm [shape: f32[64,1], index: 7, kind: input, shape index: {}]   ;;  %s5055_s8 = inlined_call_operand.hbm [shape: bf16[64,64], index: 8, kind: input, shape index: {}]   ;;  %s5056_s9 = inlined_call_operand.hbm [shape: f32[64,1], index: 9, kind: input, shape index: {}]   ;;  %s5057_s10 = inlined_call_operand.hbm [shape: bf16[1,64], index: 10, kind: input, shape index: {}]   ;;  %s5058_s11 = inlined_call_operand.<no memory space> [shape: f32[1,1], index: 11, kind: input, shape index: {}]   ;;  %s5059_s12 = inlined_call_operand.hbm [shape: f32[1,512], index: 12, kind: output, shape index: {}]  }
   0x1   :  { %5110 = sst [smem:[#allocation59_spill]] %s5047_s0  ;;  %v17_v0 = vstv %s5058_s11 }
   0x2   :  { %5111 = sst [smem:[#allocation60_spill]] %s5048_s1  ;;  %18 = vst [vmem:[#allocation2] sm:$0x1] %v17_v0 }
   0x3   :  { %5112 = sst [smem:[#allocation61_spill]] %s5050_s3 }
   0x4   :  { %5113 = sst [smem:[#allocation62_spill]] %s5051_s4 }
   0x5   :  { %5114 = sst [smem:[#allocation63_spill]] %s5052_s5 }
   0x6   :  { %5115 = sst [smem:[#allocation64_spill]] %s5053_s6 }
   0x7   :  { %5116 = sst [smem:[#allocation65_spill]] %s5054_s7 }
   0x8   :  { %5117 = sst [smem:[#allocation66_spill]] %s5056_s9 }
   0x9   :  { %5118 = sst [smem:[#allocation67_spill]] %s5059_s12 }
   0xa   :  { %19 = vsyncpa [#allocation4], 0 }
   0xb   :  { %20 = vsyncpa [#allocation7], 0 }
   0xc   :  { %22 = vsyncpa [#allocation7 + $0x1], 0 }
   0xd   :  { %23 = vsyncpa [#allocation10], 0 }
   0xe   :  { %25 = vsyncpa [#allocation10 + $0x1], 0 }
   0xf   :  { %26 = vsyncpa [#allocation13], 0 }
  0x10   :  { %27 = vsyncpa [#allocation16], 0 }
  0x11   :  { %28 = vsyncpa [#allocation19], 0 }
  0x12   :  { %29 = vsyncpa [#allocation5], 0 }
  0x13   :  { %31 = vsyncpa [#allocation5 + $0x1], 0  ;;  %s3382_s23 = smov 0   ;;  %s3384_s24 = smov 0  }
  0x14   :  { %s3386_s25 = smov 0   ;;  %s3388_s26 = smov 0  }
  0x15 LB: > { %5119 = sst [smem:[#allocation30_spill]] %s3281_s23  ;;  %s3295_s11 = smov [#allocation11]   ;;  %s3293_s26 = sphi %s3388_s26, %s5319_s26   ;;  %s3289_s25 = sphi %s3386_s25, %s5321_s25   ;;  %s3285_s24 = sphi %s3384_s24, %s5323_s24   ;;  %s3281_s23 = sphi %s3382_s23, %s5322_s23  }
  0x16   : > { %5120 = sst [smem:[#allocation31_spill]] %s3289_s25  ;;  %s360_s27 = sshll.u32 %s3295_s11, 4  ;;  %s3408_s27 = int_to_ptr.vmem [resolvable:$true] %s360_s27 }
  0x17   : > { %s3403_s28 = sadd.s32 4294967295, %s3293_s26   ;;  %p2481_p0 = scmp.ge.s32.totalorder %s3293_s26, 1 }
  0x18   : > { %p5063_p1 = scmp.eq.s32.totalorder %s3403_s28, 0  ;;  %p335_p2 = scmp.lt.s32.totalorder %s3293_s26, 3 }
  0x19   : > { %s3296_s30 = smov [#allocation12]   ;;  %s3297_s15 = smov [#allocation15]  }
  0x1a   : > { %p3410_p3 = pnand %p2481_p0, %p335_p2  ;;  %s373_s13 = sshll.u32 %s3296_s30, 4  ;;  %s3423_s13 = int_to_ptr.vmem [resolvable:$true] %s373_s13 }
  0x1b   : > { %s3425_s16 = sshll.u32 %s3297_s15, 4  ;;  %s5124_s4 = sld [smem:[#allocation62_spill]]  ;;  %s400_s16 = int_to_ptr.vmem [resolvable:$true] %s3425_s16 }
  0x1c   : > { %s5121_s29 = scalar_select %p3410_p3, 1, 0 }
  0x1d   : > { %p2631_p5 = pneg %p3410_p3 }
  0x1e   : > { %5122 = sst [smem:[#allocation32_spill]] %s5121_s29 }
  0x1f   : > { %p3419_p6 = pnand %p2631_p5, %p5063_p1 }
  0x21   : > { %s5123_s14 = scalar_select %p3419_p6, 1, 0 }
  0x22   : > { %s2889_s19 = scalar_lea.hbm %s5124_s4, 512  ;;  %p3435_p8 = pneg %p3419_p6 }
  0x23   : > { %p2890_p7 = scmp.ne.s32.totalorder %s5124_s4, %s2889_s19  ;;  %p2896_p11 = scmp.lt.u32.totalorder %s2889_s19, %s5124_s4 }
  0x24   : > { %s5125_s22 = scalar_select %p3435_p8, 1, 0 }
  0x25   : > { %p2892_p9 = pnand %p3435_p8, %p2890_p7 }
  0x27   : > { %p2893_p10 = pneg %p2892_p9 }
  0x29   : > { %p2898_p12 = pnand %p2896_p11, %p2893_p10 }
  0x2b   : > { %2901 = shalt.err (!%p2898_p12)
}
  0x2c   : > { %s2902_s15 = scalar_lea.vmem %s3408_s27, 512  ;;  %p2910_p5 = scmp.lt.s32.totalorder %s3408_s27, %s3408_s27 }
  0x2d   : > { %p2903_p13 = scmp.ne.s32.totalorder %s3408_s27, %s2902_s15  ;;  %p2911_p4 = scmp.lt.s32.totalorder %s2902_s15, %s2902_s15 }
  0x2f   : > { %p2905_p0 = pnand %p2903_p13, %p3435_p8  ;;  %p2912_p7 = por %p2911_p4, %p2910_p5 }
  0x31   : > { %p2906_p2 = pneg %p2905_p0 }
  0x33   : > { %p2913_p9 = pnand %p2912_p7, %p2906_p2 }
  0x35   : > { %2916 = shalt.err (!%p2913_p9)
}
  0x36   : > { %s5065_s17 = smov 64   ;;  %s5067_s18 = smov 4  }
  0x37   : > { %2637 = dma.hbm_to_vmem [thread:$0]  (!%p3419_p6), %s5124_s4, 512, %s3408_s27, [#allocation10], %s5065_s17, %s5065_s17, %s5067_s18  }
  0x38   : > { %s5126_s5 = sld [smem:[#allocation63_spill]] }
  0x3e   : > { %s2917_s30 = scalar_lea.hbm %s5126_s5, 512 }
  0x3f   : > { %p2918_p4 = scmp.ne.s32.totalorder %s5126_s5, %s2917_s30  ;;  %p2924_p12 = scmp.lt.u32.totalorder %s2917_s30, %s5126_s5 }
  0x41   : > { %p2920_p10 = pnand %p2918_p4, %p3435_p8 }
  0x43   : > { %p2921_p11 = pneg %p2920_p10 }
  0x45   : > { %p2926_p13 = pnand %p2924_p12, %p2921_p11 }
  0x47   : > { %2929 = shalt.err (!%p2926_p13)
}
  0x48   : > { %s2930_s27 = scalar_lea.vmem %s3423_s13, 512  ;;  %p2938_p7 = scmp.lt.s32.totalorder %s3423_s13, %s3423_s13 }
  0x49   : > { %p2931_p0 = scmp.ne.s32.totalorder %s3423_s13, %s2930_s27  ;;  %p2939_p9 = scmp.lt.s32.totalorder %s2930_s27, %s2930_s27 }
  0x4b   : > { %p2933_p2 = pnand %p2931_p0, %p3435_p8  ;;  %p2940_p4 = por %p2939_p9, %p2938_p7 }
  0x4d   : > { %p2934_p5 = pneg %p2933_p2 }
  0x4f   : > { %p2941_p10 = pnand %p2940_p4, %p2934_p5 }
  0x51   : > { %2944 = shalt.err (!%p2941_p10)
}
  0x52   : > { %2640 = dma.hbm_to_vmem [thread:$0]  (!%p3419_p6), %s5126_s5, 512, %s3423_s13, [#allocation13], %s5065_s17, %s5065_s17, %s5067_s18  }
  0x53   : > { %s5127_s7 = sld [smem:[#allocation65_spill]] }
  0x59   : > { %s2945_s20 = scalar_lea.hbm %s5127_s7, 1024 }
  0x5a   : > { %p2946_p11 = scmp.ne.s32.totalorder %s5127_s7, %s2945_s20  ;;  %p2952_p0 = scmp.lt.u32.totalorder %s2945_s20, %s5127_s7 }
  0x5c   : > { %p2948_p12 = pnand %p2946_p11, %p3435_p8 }
  0x5e   : > { %p2949_p13 = pneg %p2948_p12 }
  0x60   : > { %p2954_p2 = pnand %p2952_p0, %p2949_p13 }
  0x62   : > { %2957 = shalt.err (!%p2954_p2)
}
  0x63   : > { %s2958_s27 = scalar_lea.vmem %s400_s16, 1024  ;;  %p2966_p4 = scmp.lt.s32.totalorder %s400_s16, %s400_s16 }
  0x64   : > { %p2959_p5 = scmp.ne.s32.totalorder %s400_s16, %s2958_s27  ;;  %p2967_p10 = scmp.lt.s32.totalorder %s2958_s27, %s2958_s27 }
  0x66   : > { %p2961_p7 = pnand %p2959_p5, %p3435_p8  ;;  %p2968_p1 = por %p2967_p10, %p2966_p4 }
  0x68   : > { %p2962_p9 = pneg %p2961_p7 }
  0x6a   : > { %p2969_p3 = pnand %p2968_p1, %p2962_p9 }
  0x6c   : > { %2972 = shalt.err (!%p2969_p3)
}
  0x6d   : > { %s5069_s13 = smov 128   ;;  %s5071_s3 = smov 8  }
  0x6e   : > { %2646 = dma.hbm_to_vmem [thread:$0]  (!%p3419_p6), %s5127_s7, 1024, %s400_s16, [#allocation16], %s5069_s13, %s5069_s13, %s5071_s3  }
  0x6f   : > { %s3302_s19 = smov [#allocation18]   ;;  %s5128_s9 = sld [smem:[#allocation66_spill]] }
  0x70   : > { %s425_s20 = sshll.u32 %s3302_s19, 4  ;;  %s426_s20 = int_to_ptr.vmem [resolvable:$true] %s425_s20 }
  0x75   : > { %s2973_s30 = scalar_lea.hbm %s5128_s9, 1024 }
  0x76   : > { %p2974_p1 = scmp.ne.s32.totalorder %s5128_s9, %s2973_s30  ;;  %p2980_p12 = scmp.lt.u32.totalorder %s2973_s30, %s5128_s9 }
  0x78   : > { %p2976_p3 = pnand %p2974_p1, %p3435_p8 }
  0x7a   : > { %p2977_p11 = pneg %p2976_p3 }
  0x7c   : > { %p2982_p13 = pnand %p2980_p12, %p2977_p11 }
  0x7e   : > { %2985 = shalt.err (!%p2982_p13)
}
  0x7f   : > { %s2986_s16 = scalar_lea.vmem %s426_s20, 1024  ;;  %p2994_p7 = scmp.lt.s32.totalorder %s426_s20, %s426_s20 }
  0x80   : > { %p2987_p0 = scmp.ne.s32.totalorder %s426_s20, %s2986_s16  ;;  %p2995_p9 = scmp.lt.s32.totalorder %s2986_s16, %s2986_s16 }
  0x82   : > { %p2989_p2 = pnand %p2987_p0, %p3435_p8  ;;  %p2996_p4 = por %p2995_p9, %p2994_p7 }
  0x84   : > { %p2990_p5 = pneg %p2989_p2 }
  0x86   : > { %p2997_p10 = pnand %p2996_p4, %p2990_p5 }
  0x88   : > { %3000 = shalt.err (!%p2997_p10)
}
  0x89   : > { %2652 = dma.hbm_to_vmem [thread:$0]  (!%p3419_p6), %s5128_s9, 1024, %s426_s20, [#allocation19], %s5069_s13, %s5069_s13, %s5071_s3  }
  0x8a   : > { %s2480_s12 = sadd.s32 4294967294, %s3293_s26   ;;  %s3530_s29 = sadd.s32 1, %s3293_s26  }
  0x8b   : > { %5129 = sst [smem:[#allocation33_spill]] %s3530_s29  ;;  %s62_s19 = ssub.s32 %s3293_s26, %s3530_s29 }
  0x8c   : > { %s65_s21 = sadd.s32 1, %s3289_s25  ;;  %p63_p1 = scmp.eq.s32.totalorder %s62_s19, 0 }
  0x8d   : > { %p72_p3 = scmp.ne.s32.totalorder %s3289_s25, %s3285_s24  ;;  %p73_p11 = scmp.eq.s32.totalorder %s3293_s26, 0 }
  0x8e   : > { %p78_p12 = scmp.ne.s32.totalorder %s3285_s24, %s3281_s23  ;;  %p5132_p0 = scmp.eq.s32.totalorder %s3403_s28, 0 }
  0x8f   : > { %s3541_s11 = scalar_select %p63_p1, %s3289_s25, %s65_s21  }
  0x90   : > { %p3543_p13 = por %p73_p11, %p72_p3  ;;  %p3549_p2 = por %p5132_p0, %p78_p12 }
  0x91   : > { %5130 = sst [smem:[#allocation34_spill]] %s3541_s11  ;;  %p322_p5 = scmp.eq.s32.totalorder %s3403_s28, 1 }
  0x92   : > { %s5133_s20 = scalar_select %p3549_p2, 1, 0 }
  0x93   : > { %p328_p7 = scmp.eq.s32.totalorder %s2480_s12, 1  ;;  %p2678_p9 = scmp.lt.s32.totalorder %s3293_s26, 2 }
  0x94   : > { %5134 = sst [smem:[#allocation35_spill]] %s5133_s20  ;;  %p3556_p4 = por %p322_p5, %p72_p3 }
  0x95   : > { %p3560_p10 = por %p328_p7, %p78_p12  ;;  %s455_s17 = sand.u32 1, %s3289_s25  }
  0x96   : > { %s5135_s27 = scalar_select %p3556_p4, 1, 0 }
  0x97   : > { %s5137_s16 = scalar_select %p3560_p10, 1, 0 }
  0x98   : > { %5136 = sst [smem:[#allocation36_spill]] %s5135_s27  ;;  %s2491_s18 = sshll.u32 %s455_s17, 4 }
  0x99   : > { %5138 = sst [smem:[#allocation37_spill]] %s5137_s16  ;;  %s2555_s19 = sshll.u32 %s3293_s26, 8 }
  0x9a   : > { %s5139_s1 = sld [smem:[#allocation60_spill]]  ;;  %s457_s12 = scalar_lea.vmem [#allocation6], %s2491_s18 }
  0x9b   : > { %s465_s15 = sshll.u32 %s457_s12, 4  ;;  %p3573_p1 = pnand %p2678_p9, %p3543_p13  ;;  %s3577_s15 = int_to_ptr.vmem [resolvable:$true] %s465_s15 }
  0x9c   : > { %s3579_s5 = sshll.u32 %s455_s17, 7  ;;  %s5141_s7 = sand.u32 1, %s3293_s26  }
  0x9d   : > { %s5140_s4 = scalar_select %p3573_p1, 1, 0 }
  0x9e   : > { %s3583_s13 = scalar_lea.sflag [#allocation7], %s5141_s7  ;;  %p3589_p11 = pneg %p3573_p1 }
  0xa0   : > { %s3569_s3 = scalar_lea.hbm %s5139_s1, %s2555_s19  ;;  %s3006_s12 = scalar_lea.hbm %s5139_s1, 512 }
  0xa1   : > { %s3001_s19 = scalar_lea.hbm %s3569_s3, 256  ;;  %p3007_p0 = scmp.lt.u32.totalorder %s3569_s3, %s5139_s1 }
  0xa2   : > { %p3002_p3 = scmp.ne.s32.totalorder %s3569_s3, %s3001_s19  ;;  %p3008_p5 = scmp.lt.u32.totalorder %s3006_s12, %s3001_s19 }
  0xa3   : > { %s5142_s21 = scalar_select %p3589_p11, 1, 0 }
  0xa4   : > { %p3004_p12 = pnand %p3589_p11, %p3002_p3  ;;  %p3009_p7 = por %p3008_p5, %p3007_p0 }
  0xa5   : > { %p3010_p9 = scmp.lt.u32.totalorder %s3001_s19, %s3569_s3 }
  0xa6   : > { %p3005_p13 = pneg %p3004_p12 }
  0xa7   : > { %p3011_p10 = por %p3010_p9, %p3009_p7 }
  0xa9   : > { %p3012_p4 = pnand %p3011_p10, %p3005_p13 }
  0xab   : > { %3015 = shalt.err (!%p3012_p4)
}
  0xac   : > { %s3016_s7 = scalar_lea.vmem %s3577_s15, 256  ;;  %s3303_s30 = smov [#allocation6]  }
  0xad   : > { %p3017_p3 = scmp.ne.s32.totalorder %s3577_s15, %s3016_s7  ;;  %s3021_s18 = sshll.u32 %s3303_s30, 4  ;;  %s3022_s18 = int_to_ptr.vmem [resolvable:$false] %s3021_s18 }
  0xae   : > { %s3023_s9 = scalar_lea.vmem %s3022_s18, 512  ;;  %p3024_p6 = scmp.lt.s32.totalorder %s3577_s15, %s3022_s18 }
  0xaf   : > { %p3019_p12 = pnand %p3017_p3, %p3589_p11  ;;  %p3025_p8 = scmp.lt.s32.totalorder %s3023_s9, %s3016_s7 }
  0xb1   : > { %p3020_p2 = pneg %p3019_p12  ;;  %p3026_p0 = por %p3025_p8, %p3024_p6 }
  0xb3   : > { %p3027_p5 = pnand %p3026_p0, %p3020_p2 }
  0xb5   : > { %3030 = shalt.err (!%p3027_p5)
}
  0xb6   : > { %2659 = dma.hbm_to_vmem [thread:$0]  (!%p3573_p1), %s3569_s3, 256, %s3577_s15, %s3583_s13  }
  0xb7   : > { %s476_s19 = scalar_lea.vmem [#allocation8], %s3579_s5  ;;  %s497_s17 = scalar_lea.vmem [#allocation9], %s3579_s5 }
  0xb8   : > { %s483_s12 = sshll.u32 %s476_s19, 4  ;;  %s504_s30 = sshll.u32 %s497_s17, 4  ;;  %s3614_s12 = int_to_ptr.vmem [resolvable:$true] %s483_s12  ;;  %s3617_s30 = int_to_ptr.vmem [resolvable:$true] %s504_s30 }
  0xb9   : > { %s3304_s7 = smov [#allocation3]   ;;  %s5143_s0 = sld [smem:[#allocation59_spill]] }
  0xba   : > { %s347_s18 = sshll.u32 %s3304_s7, 4  ;;  %p5144_p8 = scmp.ne.s32.totalorder %s5125_s22, 0  ;;  %s348_s18 = int_to_ptr.vmem [resolvable:$true] %s347_s18 }
  0xbf   : > { %s3031_s11 = scalar_lea.hbm %s5143_s0, 256 }
  0xc0   : > { %p3032_p6 = scmp.ne.s32.totalorder %s5143_s0, %s3031_s11  ;;  %p3038_p10 = scmp.lt.u32.totalorder %s3031_s11, %s5143_s0 }
  0xc2   : > { %p3034_p2 = pnand %p3032_p6, %p5144_p8 }
  0xc4   : > { %p3035_p4 = pneg %p3034_p2 }
  0xc6   : > { %p3040_p13 = pnand %p3038_p10, %p3035_p4 }
  0xc8   : > { %3043 = shalt.err (!%p3040_p13)
}
  0xc9   : > { %s3044_s5 = scalar_lea.vmem %s348_s18, 256  ;;  %p3052_p12 = scmp.lt.s32.totalorder %s348_s18, %s348_s18 }
  0xca   : > { %p3045_p7 = scmp.ne.s32.totalorder %s348_s18, %s3044_s5  ;;  %p3053_p0 = scmp.lt.s32.totalorder %s3044_s5, %s3044_s5 }
  0xcc   : > { %p3047_p9 = pnand %p3045_p7, %p5144_p8  ;;  %p3054_p5 = por %p3053_p0, %p3052_p12 }
  0xce   : > { %p3048_p3 = pneg %p3047_p9 }
  0xd0   : > { %p3055_p1 = pnand %p3054_p5, %p3048_p3 }
  0xd2   : > { %3058 = shalt.err (!%p3055_p1)
}
  0xd3   : > { %p5145_p6 = scmp.ne.s32.totalorder %s5123_s14, 0  ;;  %s5146_s1 = smov 8  }
  0xd4   : > { %s5147_s25 = smov 128   ;;  %s3305_s19 = smov [#allocation14]  }
  0xd5   : > { %2634 = dma.hbm_to_vmem [thread:$0]  (!%p5145_p6), %s5143_s0, 256, %s348_s18, [#allocation4], %s5147_s25, %s5147_s25, %s5146_s1  }
  0xd6   : > { %s386_s17 = sshll.u32 %s3305_s19, 4  ;;  %s3306_s7 = smov [#allocation17]   ;;  %s387_s17 = int_to_ptr.vmem [resolvable:$true] %s386_s17 }
  0xd7   : > { %s412_s9 = sshll.u32 %s3306_s7, 4  ;;  %s5148_s6 = sld [smem:[#allocation64_spill]]  ;;  %s413_s9 = int_to_ptr.vmem [resolvable:$true] %s412_s9 }
  0xdd   : > { %s3059_s5 = scalar_lea.hbm %s5148_s6, 512 }
  0xde   : > { %p3060_p1 = scmp.ne.s32.totalorder %s5148_s6, %s3059_s5  ;;  %p3066_p10 = scmp.lt.u32.totalorder %s3059_s5, %s5148_s6 }
  0xe0   : > { %p3062_p2 = pnand %p3060_p1, %p5144_p8 }
  0xe2   : > { %p3063_p4 = pneg %p3062_p2 }
  0xe4   : > { %p3068_p13 = pnand %p3066_p10, %p3063_p4 }
  0xe6   : > { %3071 = shalt.err (!%p3068_p13)
}
  0xe7   : > { %s3072_s18 = scalar_lea.vmem %s387_s17, 512  ;;  %p3080_p12 = scmp.lt.s32.totalorder %s387_s17, %s387_s17 }
  0xe8   : > { %p3073_p7 = scmp.ne.s32.totalorder %s387_s17, %s3072_s18  ;;  %p3081_p0 = scmp.lt.s32.totalorder %s3072_s18, %s3072_s18 }
  0xea   : > { %p3075_p9 = pnand %p3073_p7, %p5144_p8  ;;  %p3082_p5 = por %p3081_p0, %p3080_p12 }
  0xec   : > { %p3076_p3 = pneg %p3075_p9 }
  0xee   : > { %p3083_p11 = pnand %p3082_p5, %p3076_p3 }
  0xf0   : > { %3086 = shalt.err (!%p3083_p11)
}
  0xf1   : > { %s5149_s23 = smov 4   ;;  %s5150_s16 = smov 64  }
  0xf2   : > { %2643 = dma.hbm_to_vmem [thread:$0]  (!%p5145_p6), %s5148_s6, 512, %s387_s17, [#allocation13], %s5150_s16, %s5150_s16, %s5149_s23  }
  0xf3   : > { %s3087_s3 = scalar_lea.hbm %s5055_s8, 512 }
  0xf4   : > { %p3088_p1 = scmp.ne.s32.totalorder %s5055_s8, %s3087_s3  ;;  %p3094_p4 = scmp.lt.u32.totalorder %s3087_s3, %s5055_s8 }
  0xf6   : > { %p3090_p11 = pnand %p3088_p1, %p5144_p8 }
  0xf8   : > { %p3091_p2 = pneg %p3090_p11 }
  0xfa   : > { %p3096_p10 = pnand %p3094_p4, %p3091_p2 }
  0xfc   : > { %3099 = shalt.err (!%p3096_p10)
}
  0xfd   : > { %s3100_s27 = scalar_lea.vmem %s413_s9, 512  ;;  %p3108_p3 = scmp.lt.s32.totalorder %s413_s9, %s413_s9 }
  0xfe   : > { %p3101_p13 = scmp.ne.s32.totalorder %s413_s9, %s3100_s27  ;;  %p3109_p12 = scmp.lt.s32.totalorder %s3100_s27, %s3100_s27 }
 0x100   : > { %p3103_p7 = pnand %p3101_p13, %p5144_p8  ;;  %p3110_p0 = por %p3109_p12, %p3108_p3 }
 0x102   : > { %p3104_p9 = pneg %p3103_p7 }
 0x104   : > { %p3111_p5 = pnand %p3110_p0, %p3104_p9 }
 0x106   : > { %3114 = shalt.err (!%p3111_p5)
}
 0x107   : > { %2649 = dma.hbm_to_vmem [thread:$0]  (!%p5145_p6), %s5055_s8, 512, %s413_s9, [#allocation16], %s5150_s16, %s5150_s16, %s5149_s23  }
 0x108   : > { %s3307_s19 = smov [#allocation20]   ;;  %s2556_s3 = sshll.u32 %s3293_s26, 7 }
 0x109   : > { %s439_s7 = sshll.u32 %s3307_s19, 4  ;;  %s3686_s29 = scalar_lea.hbm %s5049_s2, %s2556_s3  ;;  %s440_s7 = int_to_ptr.vmem [resolvable:$true] %s439_s7 }
 0x10a   : > { %s3115_s0 = scalar_lea.hbm %s5057_s10, 16 }
 0x10b   : > { %p3116_p1 = scmp.ne.s32.totalorder %s5057_s10, %s3115_s0  ;;  %p3122_p4 = scmp.lt.u32.totalorder %s3115_s0, %s5057_s10 }
 0x10d   : > { %p3118_p11 = pnand %p3116_p1, %p5144_p8 }
 0x10f   : > { %p3119_p2 = pneg %p3118_p11 }
 0x111   : > { %p3124_p10 = pnand %p3122_p4, %p3119_p2 }
 0x113   : > { %3127 = shalt.err (!%p3124_p10)
}
 0x114   : > { %s3128_s16 = scalar_lea.vmem %s440_s7, 16  ;;  %s3135_s17 = scalar_lea.vmem %s440_s7, 32 }
 0x115   : > { %p3129_p13 = scmp.ne.s32.totalorder %s440_s7, %s3128_s16  ;;  %p3136_p3 = scmp.lt.s32.totalorder %s440_s7, %s440_s7 }
 0x116   : > { %p3137_p12 = scmp.lt.s32.totalorder %s3135_s17, %s3128_s16 }
 0x117   : > { %p3131_p7 = pnand %p3129_p13, %p5144_p8 }
 0x118   : > { %p3138_p0 = por %p3137_p12, %p3136_p3 }
 0x119   : > { %p3132_p9 = pneg %p3131_p7 }
 0x11b   : > { %p3139_p5 = pnand %p3138_p0, %p3132_p9 }
 0x11d   : > { %3142 = shalt.err (!%p3139_p5)
}
 0x11e   : > { %2655 = dma.hbm_to_vmem [thread:$0]  (!%p5145_p6), %s5057_s10, 16, %s440_s7, [#allocation19]  }
 0x11f   : > { %s5151_s11 = sld [smem:[#allocation61_spill]]  ;;  %s3143_s15 = scalar_lea.hbm %s3686_s29, 2048 }
 0x120   : > { %p3144_p8 = scmp.ne.s32.totalorder %s3686_s29, %s3143_s15  ;;  %p5152_p1 = scmp.ne.s32.totalorder %s5142_s21, 0 }
 0x121   : > { %s3148_s18 = scalar_lea.hbm %s5049_s2, 4096  ;;  %p3149_p4 = scmp.lt.u32.totalorder %s3686_s29, %s5049_s2 }
 0x122   : > { %p3146_p11 = pnand %p3144_p8, %p5152_p1  ;;  %p3150_p10 = scmp.lt.u32.totalorder %s3148_s18, %s3143_s15 }
 0x123   : > { %p3152_p13 = scmp.lt.u32.totalorder %s3143_s15, %s3686_s29 }
 0x124   : > { %p3147_p2 = pneg %p3146_p11  ;;  %p3151_p6 = por %p3150_p10, %p3149_p4 }
 0x125   : > { %s3709_s19 = scalar_lea.hbm %s5151_s11, %s2556_s3 }
 0x126   : > { %p3153_p7 = por %p3152_p13, %p3151_p6 }
 0x128   : > { %p3154_p9 = pnand %p3153_p7, %p3147_p2 }
 0x12a   : > { %3157 = shalt.err (!%p3154_p9)
}
 0x12b   : > { %s3158_s7 = scalar_lea.vmem %s3614_s12, 2048  ;;  %s3308_s3 = smov [#allocation8]  }
 0x12c   : > { %p3159_p3 = scmp.ne.s32.totalorder %s3614_s12, %s3158_s7  ;;  %s3163_s23 = sshll.u32 %s3308_s3, 4  ;;  %s3164_s23 = int_to_ptr.vmem [resolvable:$false] %s3163_s23 }
 0x12d   : > { %s3165_s16 = scalar_lea.vmem %s3164_s23, 4096  ;;  %p3166_p5 = scmp.lt.s32.totalorder %s3614_s12, %s3164_s23 }
 0x12e   : > { %p3161_p12 = pnand %p3159_p3, %p5152_p1  ;;  %p3167_p8 = scmp.lt.s32.totalorder %s3165_s16, %s3158_s7 }
 0x130   : > { %p3162_p0 = pneg %p3161_p12  ;;  %p3168_p11 = por %p3167_p8, %p3166_p5 }
 0x132   : > { %p3169_p4 = pnand %p3168_p11, %p3162_p0 }
 0x134   : > { %3172 = shalt.err (!%p3169_p4)
}
 0x135   : > { %s3309_s17 = smov 256   ;;  %p5153_p2 = scmp.ne.s32.totalorder %s5140_s4, 0 }
 0x136   : > { %s5154_s6 = sand.u32 1, %s3293_s26   ;;  %s3173_s0 = scalar_lea.hbm %s3709_s19, 2048 }
 0x137   : > { %2662 = dma.hbm_to_vmem [thread:$0]  (!%p5153_p2), %s3686_s29, 2048, %s3614_s12, %s3583_s13, %s3309_s17, %s5147_s25, %s5146_s1  }
 0x138   : > { %s3738_s20 = scalar_lea.sflag [#allocation10], %s5154_s6  ;;  %p3174_p10 = scmp.ne.s32.totalorder %s3709_s19, %s3173_s0 }
 0x139   : > { %s3178_s14 = scalar_lea.hbm %s5151_s11, 4096  ;;  %p3179_p7 = scmp.lt.u32.totalorder %s3709_s19, %s5151_s11 }
 0x13a   : > { %p3176_p6 = pnand %p3174_p10, %p5152_p1  ;;  %p3180_p9 = scmp.lt.u32.totalorder %s3178_s14, %s3173_s0 }
 0x13b   : > { %p3182_p12 = scmp.lt.u32.totalorder %s3173_s0, %s3709_s19 }
 0x13c   : > { %p3177_p13 = pneg %p3176_p6  ;;  %p3181_p3 = por %p3180_p9, %p3179_p7 }
 0x13e   : > { %p3183_p0 = por %p3182_p12, %p3181_p3 }
 0x140   : > { %p3184_p5 = pnand %p3183_p0, %p3177_p13 }
 0x142   : > { %3187 = shalt.err (!%p3184_p5)
}
 0x143   : > { %s3188_s13 = scalar_lea.vmem %s3617_s30, 2048  ;;  %s3310_s12 = smov [#allocation9]  }
 0x144   : > { %p3189_p8 = scmp.ne.s32.totalorder %s3617_s30, %s3188_s13  ;;  %s3193_s29 = sshll.u32 %s3310_s12, 4  ;;  %s3194_s29 = int_to_ptr.vmem [resolvable:$false] %s3193_s29 }
 0x145   : > { %s3195_s27 = scalar_lea.vmem %s3194_s29, 4096  ;;  %p3196_p10 = scmp.lt.s32.totalorder %s3617_s30, %s3194_s29 }
 0x146   : > { %p3191_p11 = pnand %p3189_p8, %p5152_p1  ;;  %p3197_p6 = scmp.lt.s32.totalorder %s3195_s27, %s3188_s13 }
 0x148   : > { %p3192_p4 = pneg %p3191_p11  ;;  %p3198_p7 = por %p3197_p6, %p3196_p10 }
 0x14a   : > { %p3199_p9 = pnand %p3198_p7, %p3192_p4 }
 0x14c   : > { %3202 = shalt.err (!%p3199_p9)
}
 0x14d   : > { %2665 = dma.hbm_to_vmem [thread:$0]  (!%p5153_p2), %s3709_s19, 2048, %s3617_s30, %s3738_s20, %s3309_s17, %s5147_s25, %s5146_s1  }
 0x14e   : > { %s5155_s21 = sld [smem:[#allocation32_spill]] }
 0x154   : > { %p5156_p1 = scmp.ne.s32.totalorder %s5155_s21, 0 }
 0x156   : > { %516 = sbr.rel (%p5156_p1) target bundleno = 1462 (0x5b6), region = 68 }
 0x15d   : > { %p5157_p13 = scmp.eq.s32.totalorder %s3403_s28, 0 }
 0x15f   : > { %3248 = dma.done.wait (%p5157_p13), [#allocation4], 256   ;;  %p5158_p3 = pmov %p5157_p13 }
 0x160   : > { %s5159_s9 = sld [smem:[#allocation35_spill]]  ;;  %s522_s4 = sand.u32 1, %s3403_s28  }
 0x161   : > { %3250 = vsyncadd (%p5158_p3), [#allocation4], 4294967040  ;;  %s3773_s7 = sand.u32 1, %s3285_s24   ;;  %s523_s23 = scalar_lea.sflag [#allocation7], %s522_s4 }
 0x162   : > { %s2502_s3 = sshll.u32 %s3773_s7, 4 }
 0x163   : > { %s3776_s16 = scalar_lea.vmem [#allocation6], %s2502_s3 }
 0x166   : > { %p5160_p2 = scmp.ne.s32.totalorder %s5159_s9, 0 }
 0x168   : > { %3252 = dma.done.wait (%p5160_p2), %s523_s23, 2304  }
 0x169   : > { %3254 = vsyncadd (%p5160_p2), %s523_s23, 4294964992  ;;  %s2503_s30 = sshll.u32 %s3773_s7, 7  ;;  %s541_s25 = scalar_lea.sflag [#allocation10], %s522_s4 }
 0x16a   : > { %s3783_s1 = scalar_lea.vmem [#allocation8], %s2503_s30  ;;  %s3785_s19 = scalar_lea.vmem [#allocation9], %s2503_s30 }
 0x16b   : > { %3256 = dma.done.wait (%p5160_p2), %s541_s25, 2048  }
 0x16c   : > { %3258 = vsyncadd (%p5160_p2), %s541_s25, 4294965248  ;;  %p5161_p12 = pmov %p5158_p3 }
 0x16d   : > { %p5162_p0 = pmov %p5158_p3 }
 0x16e   : > { %3260 = dma.done.wait (%p5161_p12), [#allocation10], 512  }
 0x16f   : > { %3262 = vsyncadd (%p5162_p0), [#allocation10], 4294966784  ;;  %p5163_p5 = pmov %p5162_p0 }
 0x170   : > { %p5164_p8 = pmov %p5162_p0 }
 0x171   : > { %3264 = dma.done.wait (%p5163_p5), [#allocation13], 1024  }
 0x172   : > { %3266 = vsyncadd (%p5164_p8), [#allocation13], 4294966272  ;;  %p5165_p11 = pmov %p5162_p0 }
 0x173   : > { %p5166_p4 = pmov %p5162_p0 }
 0x174   : > { %3268 = dma.done.wait (%p5165_p11), [#allocation16], 1536  }
 0x175   : > { %3270 = vsyncadd (%p5166_p4), [#allocation16], 4294965760  ;;  %p5167_p10 = pmov %p5162_p0 }
 0x176   : > { %p5168_p6 = pmov %p5162_p0 }
 0x177   : > { %3272 = dma.done.wait (%p5167_p10), [#allocation19], 1040  }
 0x178   : > { %3274 = vsyncadd (%p5168_p6), [#allocation19], 4294966256  ;;  %v5093_v1 = vmov 0   ;;  %v628_v2 = vld [vmem:[#allocation3] sm:$0xff]  ;;  %v629_v3 = vld [vmem:[#allocation3 + $0x8] sm:$0xff]  ;;  %vm1202_vm0 = vcmask 1042432   ;;  %v5092_v21 = vlaneseq }
 0x179   : > { %2735 = vset.pattern.permute.xlu0 %v5093_v1  ;;  %1241 = vmatprep.mubr.bf16.mxu0 %v5093_v1  ;;  %v1413_v4 = vld [vmem:[#allocation15 + $0x10] sm:$0xff]  ;;  %v1044_v5 = vld [vmem:[%s3776_s16 + $0x8] sm:$0x3f]  ;;  %v2737_v10 = vld [vmem:[#allocation11] sm:$0xff]   ;;  %vm1189_vm1 = vcmask 48128   ;;  %vm1083_vm2 = vcmask 130048  }
 0x17a   : > { %1128 = vmatprep.mubr.bf16.mxu1 %v5093_v1  ;;  %2736 = vset.pattern.permute.xlu1 %v5093_v1  ;;  %v1043_v6 = vld [vmem:[%s3776_s16] sm:$0x3f]  ;;  %v1046_v7 = vpack.c.bf16 %v1044_v5, %v1044_v5  ;;  %v2738_v13 = vld [vmem:[#allocation11 + $0x8] sm:$0xff]   ;;  %v2740_v19 = vld [vmem:[#allocation11 + $0x18] sm:$0xff]   ;;  %v3822_v23 = vshrl.u32 %v5092_v21, 7  ;;  %s2512_s17 = sshll.u32 %s3773_s7, 1 }
 0x17b   : > { %645 = vperm.xlu0 %2735, %v628_v2   ;;  %v1045_v8 = vpack.c.bf16 %v1043_v6, %v1043_v6  ;;  %v1415_v11 = vld [vmem:[#allocation15 + $0x20] sm:$0xff]  ;;  %v1417_v12 = vld [vmem:[#allocation15 + $0x30] sm:$0xff]  ;;  %v2167_v20 = vld [vmem:[#allocation2] sm:$0x1]  ;;  %s5311_s6 = sld [smem:[#allocation36_spill]]  ;;  %s2558_s20 = sshll.u32 %s3403_s28, 5 }
 0x17c   : > { %2528 = vmatprep.subr.msk.bf16.mxu0 %vm1202_vm0, %v1046_v7  ;;  %v1748_v14 = vld [vmem:[#allocation18] sm:$0xff]  ;;  %v1750_v15 = vld [vmem:[#allocation18 + $0x10] sm:$0xff]  ;;  %5169 = vst [vmem:[#allocation38_spill] sm:$0xff] %v3822_v23  ;;  %v1412_v24 = vld [vmem:[#allocation15 + $0x8] sm:$0xff]  ;;  %v639_v31 = vsub.s32 1, %v3822_v23  ;;  %v3851_v35 = vsub.s32 0, %v3822_v23 }
 0x17d   : > { %v1204_v9 = vsel %vm1202_vm0, %v1045_v8, 0  ;;  %v2739_v16 = vld [vmem:[#allocation11 + $0x10] sm:$0xff]   ;;  %v1752_v17 = vld [vmem:[#allocation18 + $0x20] sm:$0xff]  ;;  %v1414_v38 = vld [vmem:[#allocation15 + $0x18] sm:$0xff]  ;;  %s622_s0 = scalar_lea.vmem [#allocation21], %s2512_s17  ;;  %s5313_s5 = sld [smem:[#allocation67_spill]] }
 0x17e   : > { %1210 = vmatpush1.bf16.msra.mxu0 %v1204_v9  ;;  %v1754_v18 = vld [vmem:[#allocation18 + $0x30] sm:$0xff]  ;;  %v1411_v22 = vld [vmem:[#allocation15] sm:$0xff]  ;;  %5170 = vst [vmem:[#allocation39_spill] sm:$0xff] %v3851_v35  ;;  %v3861_v40 = vld [vmem:[%s3783_s1 + $0x8] sm:$0xff]  ;;  %s2289_s22 = sshll.u32 %s622_s0, 4  ;;  %s2275_s13 = scalar_lea.sflag [#allocation5], %s3773_s7  ;;  %s5005_s22 = int_to_ptr.vmem [resolvable:$true] %s2289_s22 }
 0x17f   : > { %650 = vperm.xlu0 %2735, %v629_v3   ;;  %1421 = vperm.xlu1 %2736, %v1411_v22   ;;  %v3825_v25 = vld [vmem:[%s3783_s1] sm:$0xff]  ;;  %v3828_v26 = vld [vmem:[%s3783_s1 + $0x10] sm:$0xff]  ;;  %v3865_v42 = vld [vmem:[%s3783_s1 + $0x18] sm:$0xff]  ;;  %v5098_v57 = vunpack.c.h.bf16 %v3861_v40  ;;  %s3203_s12 = scalar_lea.vmem %s5005_s22, 32  ;;  %s3313_s28 = smov [#allocation21]  }
 0x180   : > { %v2513_v27 = vld [vmem:[%s3776_s16 + $0x3] ss:$8 sm:$0x3]  ;;  %v2514_v39 = vld [vmem:[%s3776_s16 + $0x4] ss:$8 sm:$0x3]  ;;  %v5100_v41 = vunpack.c.h.bf16 %v3825_v25  ;;  %v784_v43 = vunpack.c.h.bf16 %v3828_v26  ;;  %v786_v58 = vunpack.c.h.bf16 %v3865_v42  ;;  %p3204_p7 = scmp.ne.s32.totalorder %s5005_s22, %s3203_s12 }
 0x181   : > { %2529 = vmatmul.mubr.msk.bf16.vlgmr.msra.gmra.mrb[0].mxu0 %vm1189_vm1, %v2737_v10  ;;  %v3832_v28 = vld [vmem:[%s3783_s1 + $0x20] sm:$0xff]  ;;  %v3835_v29 = vld [vmem:[%s3783_s1 + $0x30] sm:$0xff]  ;;  %v3877_v51 = vrot.slane %v2513_v27, %v639_v31  ;;  %v3880_v52 = vld [vmem:[%s3783_s1 + $0x28] sm:$0xff]  ;;  %v3884_v55 = vrot.slane %v2514_v39, %v639_v31  ;;  %v3887_v56 = vrot.slane %v2513_v27, %v3851_v35  ;;  %v3901_v63 = vrot.slane %v2514_v39, %v3851_v35  ;;  %p5314_p9 = scmp.ne.s32.totalorder %s5311_s6, 0  ;;  %s3207_s29 = sshll.u32 %s3313_s28, 4  ;;  %s3208_s29 = int_to_ptr.vmem [resolvable:$false] %s3207_s29 }
 0x182   : > { %1251 = vmatprep.mubr.bf16.mxu0 %v5093_v1  ;;  %v3838_v30 = vld [vmem:[%s3783_s1 + $0x40] sm:$0xff]  ;;  %v3842_v32 = vld [vmem:[%s3783_s1 + $0x50] sm:$0xff]  ;;  %v5099_v44 = vunpack.c.h.bf16 %v3832_v28  ;;  %v808_v45 = vunpack.c.h.bf16 %v3835_v29  ;;  %v3892_v59 = vld [vmem:[%s3783_s1 + $0x38] sm:$0xff]  ;;  %v3905_v0 = vsub.f32 %v784_v43, %v5100_v41  ;;  %s3209_s27 = scalar_lea.vmem %s3208_s29, 64  ;;  %p3210_p3 = scmp.lt.s32.totalorder %s5005_s22, %s3208_s29 }
 0x183   : > { %1431 = vperm.xlu0 %2735, %v1413_v4   ;;  %v3845_v33 = vld [vmem:[%s3783_s1 + $0x60] sm:$0xff]  ;;  %v3848_v34 = vld [vmem:[%s3783_s1 + $0x70] sm:$0xff]  ;;  %1426 = vperm.xlu1 %2736, %v1412_v24   ;;  %v5097_v47 = vunpack.c.h.bf16 %v3838_v30  ;;  %v832_v48 = vunpack.c.h.bf16 %v3842_v32  ;;  %v3895_v60 = vld [vmem:[%s3783_s1 + $0x48] sm:$0xff]  ;;  %s5003_s18 = scalar_lea.hbm %s5313_s5, %s2558_s20  ;;  %p3205_p1 = pnand %p3204_p7, %p5314_p9 }
 0x184   : > { %v3854_v36 = vld [vmem:[%s3785_s19] sm:$0xff]  ;;  %v3857_v37 = vld [vmem:[%s3785_s19 + $0x10] sm:$0xff]  ;;  %v5096_v49 = vunpack.c.h.bf16 %v3845_v33  ;;  %v856_v50 = vunpack.c.h.bf16 %v3848_v34  ;;  %v1416_v61 = vld [vmem:[#allocation15 + $0x28] sm:$0xff]  ;;  %v3909_v2 = vsub.f32 %v808_v45, %v5099_v44  ;;  %p3211_p2 = scmp.lt.s32.totalorder %s3209_s27, %s3203_s12 }
 0x185   : > { %v3871_v46 = vld [vmem:[%s3776_s16 + $0x5] ss:$8 sm:$0x3]  ;;  %v5095_v53 = vunpack.c.l.bf16 %v3854_v36  ;;  %v917_v54 = vunpack.c.l.bf16 %v3857_v37  ;;  %v3922_v6 = vsub.f32 %v832_v48, %v5097_v47  ;;  %v5105_v9 = vunpack.c.h.bf16 %v3854_v36  ;;  %p3206_p13 = pneg %p3205_p1 }
 0x186   : > { %v3898_v62 = vrot.slane %v3871_v46, %v639_v31  ;;  %v3912_v3 = vld [vmem:[%s3783_s1 + $0x58] sm:$0xff]  ;;  %v3915_v4 = vld [vmem:[%s3783_s1 + $0x68] sm:$0xff]  ;;  %v3926_v7 = vsub.f32 %v856_v50, %v5096_v49  ;;  %v3957_v31 = vld [vmem:[%s3785_s19 + $0x40] sm:$0xff]  ;;  %p3212_p12 = por %p3211_p2, %p3210_p3 }
 0x187   : > { %1441 = vperm.xlu0 %2735, %v1415_v11   ;;  %1436 = vperm.xlu1 %2736, %v1414_v38   ;;  %v3918_v5 = vld [vmem:[%s3783_s1 + $0x78] sm:$0xff]  ;;  %v3929_v8 = vld [vmem:[%s3785_s19 + $0x8] sm:$0xff]  ;;  %v918_v11 = vunpack.c.h.bf16 %v3857_v37  ;;  %v5104_v22 = vunpack.c.h.bf16 %v3915_v4  ;;  %v3965_v50 = vld [vmem:[%s3785_s19 + $0x50] sm:$0xff] }
 0x188   : > { %5171 = vst [vmem:[#allocation40_spill] sm:$0xff] %v3926_v7  ;;  %v916_v10 = vld [vmem:[%s3785_s19 + $0x18] sm:$0xff]  ;;  %v858_v24 = vunpack.c.h.bf16 %v3918_v5  ;;  %v3962_v48 = vld [vmem:[%s3785_s19 + $0x48] sm:$0xff]  ;;  %v3978_v49 = vld [vmem:[%s3785_s19 + $0x70] sm:$0xff]  ;;  %p3213_p0 = pnand %p3212_p12, %p3206_p13 }
 0x189   : > { %2530 = vmatmul.mubr.msk.bf16.gmra.mrb[4].mxu0 %vm1189_vm1, %v2738_v13  ;;  %v810_v13 = vunpack.c.h.bf16 %v3892_v59  ;;  %v940_v27 = vld [vmem:[%s3785_s19 + $0x38] sm:$0xff]  ;;  %v919_v43 = vunpack.c.l.bf16 %v916_v10  ;;  %v920_v45 = vunpack.c.h.bf16 %v916_v10  ;;  %v1749_v39 = vld [vmem:[#allocation18 + $0x8] sm:$0xff] }
 0x18a   : > { %1261 = vmatprep.mubr.bf16.mxu0 %v5093_v1  ;;  %v1418_v37 = vld [vmem:[#allocation15 + $0x38] sm:$0xff]  ;;  %v944_v44 = vunpack.c.h.bf16 %v940_v27  ;;  %v4002_v41 = vsub.f32 %v858_v24, %v5104_v22 }
 0x18b   : > { %1451 = vperm.xlu0 %2735, %v1417_v12   ;;  %v5101_v12 = vunpack.c.h.bf16 %v3880_v52  ;;  %1446 = vperm.xlu1 %2736, %v1416_v61   ;;  %v966_v61 = vunpack.c.h.bf16 %v3965_v50 }
 0x18f   : > { %1758 = vperm.xlu0 %2735, %v1748_v14   ;;  %v5102_v14 = vunpack.c.h.bf16 %v3895_v60  ;;  %1456 = vperm.xlu1 %2736, %v1418_v37   ;;  %v3997_v37 = vld [vmem:[%s3785_s19 + $0x78] sm:$0xff] }
 0x190   : > { %5173 = vst [vmem:[#allocation42_spill] sm:$0xff] %v3997_v37 }
 0x191   : > { %2531 = vmatmul.mubr.msk.bf16.gmra.mrb[8].mxu0 %vm1189_vm1, %v2739_v16  ;;  %v3942_v16 = vld [vmem:[%s3785_s19 + $0x20] sm:$0xff] }
 0x192   : > { %1271 = vmatprep.mubr.bf16.mxu0 %v5093_v1  ;;  %v5179_v7 = vunpack.c.h.bf16 %v3942_v16 }
 0x193   : > { %1768 = vperm.xlu0 %2735, %v1750_v15   ;;  %v3939_v15 = vsub.f32 %v917_v54, %v5095_v53  ;;  %v3968_v54 = vld [vmem:[%s3785_s19 + $0x58] sm:$0xff]  ;;  %v3975_v53 = vld [vmem:[%s3785_s19 + $0x60] sm:$0xff]  ;;  %1763 = vperm.xlu1 %2736, %v1749_v39   ;;  %v783_v39 = vunpack.c.l.bf16 %v3828_v26  ;;  %v809_v26 = vunpack.c.l.bf16 %v3892_v59  ;;  %v857_v59 = vunpack.c.l.bf16 %v3918_v5 }
 0x194   : > { %v968_v21 = vunpack.c.h.bf16 %v3968_v54 }
 0x195   : > { %5172 = vst [vmem:[#allocation41_spill] sm:$0xff] %v3939_v15 }
 0x197   : > { %1778 = vperm.xlu0 %2735, %v1752_v17   ;;  %v3945_v17 = vld [vmem:[%s3785_s19 + $0x28] sm:$0xff] }
 0x198   : > { %v5180_v22 = vunpack.c.l.bf16 %v3945_v17 }
 0x199   : > { %2532 = vmatmul.mubr.msk.bf16.gmra.mrb[12].mxu0 %vm1189_vm1, %v2740_v19  ;;  %v3950_v19 = vsub.f32 %v786_v58, %v5098_v57  ;;  %v943_v57 = vunpack.c.l.bf16 %v940_v27  ;;  %v990_v58 = vunpack.c.h.bf16 %v3978_v49  ;;  %v5177_v27 = vunpack.c.l.bf16 %v3942_v16 }
 0x19a   : > { %1354 = vmatprep.mubr.bf16.mxu0 %v5093_v1  ;;  %v3986_v1 = vsub.f32 %v810_v13, %v5101_v12  ;;  %v4006_v13 = vsub.f32 %v918_v11, %v5105_v9  ;;  %v5174_v12 = vunpack.c.l.bf16 %v3929_v8  ;;  %v5182_v9 = vunpack.c.h.bf16 %v3945_v17 }
 0x19b   : > { %1788 = vperm.xlu0 %2735, %v1754_v18   ;;  %v939_v18 = vld [vmem:[%s3785_s19 + $0x30] sm:$0xff]  ;;  %v4026_v11 = vsub.f32 %v943_v57, %v5180_v22  ;;  %v5185_v57 = vunpack.c.h.bf16 %v3975_v53 }
 0x19c   : > { %v941_v10 = vunpack.c.l.bf16 %v939_v18  ;;  %v942_v47 = vunpack.c.h.bf16 %v939_v18  ;;  %v3993_v18 = vld [vmem:[%s3785_s19 + $0x68] sm:$0xff] }
 0x19d   : > { %5181 = vst [vmem:[#allocation45_spill] sm:$0xff] %v4026_v11  ;;  %v4044_v22 = vsub.f32 %v990_v58, %v5185_v57  ;;  %v785_v58 = vunpack.c.l.bf16 %v3865_v42  ;;  %v5188_v42 = vunpack.c.l.bf16 %v3825_v25  ;;  %v5190_v57 = vunpack.c.l.bf16 %v3861_v40 }
 0x19e   : > { %v4018_v15 = vsub.f32 %v941_v10, %v5177_v27  ;;  %v4022_v24 = vsub.f32 %v942_v47, %v5179_v7  ;;  %v992_v7 = vunpack.c.h.bf16 %v3997_v37  ;;  %v1751_v27 = vld [vmem:[#allocation18 + $0x18] sm:$0xff] }
 0x19f   : > { %2170 = vperm.xlu0 %2735, %v2167_v20   ;;  %v834_v20 = vunpack.c.h.bf16 %v3912_v3  ;;  %1773 = vperm.xlu1 %2736, %v1751_v27   ;;  %v4070_v47 = vsub.f32 %v783_v39, %v5188_v42  ;;  %v833_v27 = vunpack.c.l.bf16 %v3912_v3  ;;  %v5194_v42 = vunpack.c.l.bf16 %v3838_v30 }
 0x1a0   : > { %5178 = vst [vmem:[#allocation44_spill] sm:$0xff] %v4018_v15  ;;  %v5196_v3 = vunpack.c.l.bf16 %v3845_v33 }
 0x1a1   : > { %v3990_v38 = vsub.f32 %v834_v20, %v5102_v14  ;;  %v4010_v20 = vsub.f32 %v919_v43, %v5174_v12  ;;  %v5176_v14 = vunpack.c.h.bf16 %v3929_v8  ;;  %v4030_v12 = vsub.f32 %v944_v44, %v5182_v9  ;;  %5189 = vst [vmem:[#allocation47_spill] sm:$0xff] %v4070_v47 }
 0x1a2   : > { %v4048_v44 = vrot.slane %v3871_v46, %v3851_v35  ;;  %v855_v46 = vunpack.c.l.bf16 %v3848_v34 }
 0x1a3   : > { %5175 = vst [vmem:[#allocation43_spill] sm:$0xff] %v4010_v20  ;;  %v4014_v23 = vsub.f32 %v920_v45, %v5176_v14  ;;  %v5183_v14 = vunpack.c.h.bf16 %v3957_v31  ;;  %v5184_v45 = vunpack.c.h.bf16 %v3962_v48 }
 0x1a4   : > { %5186 = vst [vmem:[#allocation46_spill] sm:$0xff] %v4048_v44  ;;  %v4092_v9 = vsub.f32 %v855_v46, %v5196_v3 }
 0x1a5   : > { %v4034_v43 = vsub.f32 %v966_v61, %v5183_v14  ;;  %v4038_v10 = vsub.f32 %v968_v21, %v5184_v45  ;;  %v807_v61 = vunpack.c.l.bf16 %v3835_v29  ;;  %v831_v45 = vunpack.c.l.bf16 %v3842_v32  ;;  %v1753_v14 = vld [vmem:[#allocation18 + $0x28] sm:$0xff] }
 0x1a6   : > { %v965_v29 = vunpack.c.l.bf16 %v3965_v50  ;;  %v5187_v32 = vunpack.c.h.bf16 %v3993_v18  ;;  %v967_v50 = vunpack.c.l.bf16 %v3968_v54  ;;  %5197 = vst [vmem:[#allocation51_spill] sm:$0xff] %v4092_v9  ;;  %1783 = vperm.xlu1 %2736, %v1753_v14   ;;  %v5198_v54 = vunpack.c.l.bf16 %v3880_v52 }
 0x1a7   : > { %v4088_v34 = vsub.f32 %v831_v45, %v5194_v42  ;;  %v1755_v45 = vld [vmem:[#allocation18 + $0x38] sm:$0xff] }
 0x1a8   : > { %v4066_v35 = vsub.f32 %v992_v7, %v5187_v32  ;;  %v4080_v7 = vsub.f32 %v785_v58, %v5190_v57  ;;  %v5192_v32 = vunpack.c.l.bf16 %v3832_v28  ;;  %v4096_v21 = vsub.f32 %v809_v26, %v5198_v54 }
 0x1a9   : > { %5195 = vst [vmem:[#allocation50_spill] sm:$0xff] %v4088_v34  ;;  %v5200_v58 = vunpack.c.l.bf16 %v3957_v31  ;;  %v5202_v54 = vunpack.c.l.bf16 %v3895_v60 }
 0x1aa   : > { %5191 = vst [vmem:[#allocation48_spill] sm:$0xff] %v4080_v7  ;;  %v4084_v39 = vsub.f32 %v807_v61, %v5192_v32  ;;  %5199 = vst [vmem:[#allocation52_spill] sm:$0xff] %v4096_v21  ;;  %v989_v32 = vunpack.c.l.bf16 %v3978_v49  ;;  %v5206_v49 = vunpack.c.l.bf16 %v3962_v48  ;;  %1793 = vperm.xlu1 %2736, %v1755_v45  }
 0x1ab   : > { %v4100_v57 = vsub.f32 %v965_v29, %v5200_v58  ;;  %v4111_v11 = vsub.f32 %v833_v27, %v5202_v54  ;;  %v5204_v29 = vunpack.c.l.bf16 %v3915_v4 }
 0x1ac   : > { %5193 = vst [vmem:[#allocation49_spill] sm:$0xff] %v4084_v39  ;;  %v4119_v61 = vsub.f32 %v967_v50, %v5206_v49 }
 0x1ad   : > { %5201 = vst [vmem:[#allocation53_spill] sm:$0xff] %v4100_v57  ;;  %5203 = vst [vmem:[#allocation54_spill] sm:$0xff] %v4111_v11  ;;  %v4115_v58 = vsub.f32 %v857_v59, %v5204_v29  ;;  %v5208_v59 = vunpack.c.l.bf16 %v3975_v53 }
 0x1ae   : > { %5207 = vst [vmem:[#allocation56_spill] sm:$0xff] %v4119_v61 }
 0x1af   : > { %5205 = vst [vmem:[#allocation55_spill] sm:$0xff] %v4115_v58  ;;  %v4128_v29 = vsub.f32 %v989_v32, %v5208_v59 }
 0x1b1   : > { %5209 = vst [vmem:[#allocation57_spill] sm:$0xff] %v4128_v29 }
 0x1fa   : > { %v646_v5 = vpop.permute.xlu0 %645 }
 0x1fb   : > { %v654_v42 = vmul.f32 %v646_v5, %v3877_v51  ;;  %v699_v46 = vmul.f32 %v3884_v55, %v646_v5  ;;  %v744_v14 = vmul.f32 %v3898_v62, %v646_v5  ;;  %v653_v3 = vmul.f32 %v646_v5, %v3887_v56 }
 0x1fc   : > { %v698_v26 = vmul.f32 %v3901_v63, %v646_v5  ;;  %v743_v27 = vmul.f32 %v4048_v44, %v646_v5 }
 0x1fd   : > { %v658_v57 = vadd.f32 0.5, %v654_v42  ;;  %v703_v15 = vadd.f32 0.5, %v699_v46  ;;  %v657_v20 = vadd.f32 0.5, %v653_v3  ;;  %v748_v21 = vadd.f32 0.5, %v744_v14 }
 0x1fe   : > { %v4122_v34 = vpop.permute.xlu0 %650  ;;  %v4138_v3 = vadd.f32 0.5, %v698_v26 }
 0x1ff   : > { %v662_v58 = vfloor.f32 %v658_v57  ;;  %v707_v50 = vfloor.f32 %v703_v15  ;;  %v656_v42 = vmul.f32 %v4122_v34, %v3877_v51  ;;  %v701_v46 = vmul.f32 %v3884_v55, %v4122_v34 }
 0x200   : > { %v655_v45 = vmul.f32 %v4122_v34, %v3887_v56  ;;  %v661_v14 = vfloor.f32 %v657_v20  ;;  %v700_v5 = vmul.f32 %v3901_v63, %v4122_v34  ;;  %v4142_v51 = vadd.f32 0.5, %v743_v27 }
 0x201   : > { %v666_v49 = vsub.f32 %v658_v57, %v662_v58  ;;  %v711_v32 = vsub.f32 %v703_v15, %v707_v50  ;;  %v660_v59 = vadd.f32 0.5, %v656_v42  ;;  %v705_v54 = vadd.f32 0.5, %v701_v46 }
 0x202   : > { %v659_v9 = vadd.f32 0.5, %v655_v45  ;;  %v665_v29 = vsub.f32 %v657_v20, %v661_v14  ;;  %v4140_v61 = vadd.f32 0.5, %v700_v5  ;;  %5210 = vst [vmem:[#allocation58_spill] sm:$0xff] %v4142_v51  ;;  %v746_v56 = vmul.f32 %v3898_v62, %v4122_v34 }
 0x203   : > { %v674_v55 = vmul.f32 2.0, %v666_v49  ;;  %v719_v11 = vmul.f32 2.0, %v711_v32  ;;  %v664_v39 = vfloor.f32 %v660_v59  ;;  %v709_v7 = vfloor.f32 %v705_v54 }
 0x204   : > { %v663_v63 = vfloor.f32 %v659_v9  ;;  %v4146_v26 = vmul.f32 2.0, %v665_v29  ;;  %v706_v15 = vfloor.f32 %v4138_v3  ;;  %v670_v57 = vmul.f32 %v666_v49, %v666_v49 }
 0x205   : > { %v678_v58 = vsub.f32 3.0, %v674_v55  ;;  %v668_v50 = vsub.f32 %v660_v59, %v664_v39  ;;  %v4149_v20 = vmul.f32 %v665_v29, %v665_v29  ;;  %v713_v42 = vsub.f32 %v705_v54, %v709_v7 }
 0x206   : > { %v667_v27 = vsub.f32 %v659_v9, %v663_v63  ;;  %v708_v46 = vfloor.f32 %v4140_v61  ;;  %v723_v45 = vsub.f32 3.0, %v719_v11  ;;  %v715_v62 = vmul.f32 %v711_v32, %v711_v32 }
 0x207   : > { %v4152_v14 = vmul.f32 %v678_v58, %v670_v57  ;;  %v676_v5 = vmul.f32 2.0, %v668_v50  ;;  %v750_v37 = vadd.f32 0.5, %v746_v56  ;;  %v672_v47 = vmul.f32 %v668_v50, %v668_v50 }
 0x208   : > { %v721_v51 = vmul.f32 2.0, %v713_v42  ;;  %v4154_v44 = vmul.f32 2.0, %v667_v27  ;;  %v677_v49 = vsub.f32 3.0, %v4146_v26  ;;  %v4157_v39 = vmul.f32 %v667_v27, %v667_v27 }
 0x209   : > { %v680_v55 = vsub.f32 3.0, %v676_v5  ;;  %v717_v29 = vmul.f32 %v713_v42, %v713_v42  ;;  %v752_v7 = vfloor.f32 %v748_v21  ;;  %v4159_v54 = vmul.f32 %v723_v45, %v715_v62 }
 0x20a   : > { %v725_v9 = vsub.f32 3.0, %v721_v51  ;;  %v754_v11 = vfloor.f32 %v750_v37  ;;  %v792_v59 = vmul.f32 %v3905_v0, %v4152_v14  ;;  %v816_v63 = vmul.f32 %v3909_v2, %v4152_v14 }
 0x20b   : > { %v684_v32 = vmul.f32 %v680_v55, %v672_v47  ;;  %v756_v56 = vsub.f32 %v748_v21, %v752_v7  ;;  %v840_v57 = vmul.f32 %v3922_v6, %v4152_v14  ;;  %v679_v58 = vsub.f32 3.0, %v4154_v44 }
 0x20c   : > { %v4168_v50 = vmul.f32 %v725_v9, %v717_v29  ;;  %v758_v42 = vsub.f32 %v750_v37, %v754_v11  ;;  %v5211_v51 = vunpack.c.h.bf16 %v3825_v25  ;;  %v5212_v2 = vunpack.c.h.bf16 %v3832_v28 }
 0x20d   : > { %v760_v45 = vmul.f32 %v756_v56, %v756_v56  ;;  %v764_v5 = vmul.f32 2.0, %v756_v56  ;;  %v794_v0 = vmul.f32 %v3950_v19, %v684_v32  ;;  %v818_v47 = vmul.f32 %v3986_v1, %v684_v32 }
 0x20e   : > { %v796_v27 = vadd.f32 %v792_v59, %v5211_v51  ;;  %v762_v21 = vmul.f32 %v758_v42, %v758_v42  ;;  %v766_v62 = vmul.f32 2.0, %v758_v42  ;;  %v820_v55 = vadd.f32 %v816_v63, %v5212_v2  ;;  %v5217_v42 = vld [vmem:[#allocation40_spill] sm:$0xff] }
 0x20f   : > { %v842_v6 = vmul.f32 %v3990_v38, %v684_v32  ;;  %v768_v44 = vsub.f32 3.0, %v764_v5  ;;  %v5213_v29 = vunpack.c.h.bf16 %v3861_v40  ;;  %v5214_v7 = vunpack.c.h.bf16 %v3880_v52 }
 0x210   : > { %v5215_v11 = vunpack.c.h.bf16 %v3838_v30  ;;  %v770_v19 = vsub.f32 3.0, %v766_v62  ;;  %v5216_v1 = vunpack.c.h.bf16 %v3895_v60  ;;  %v864_v51 = vmul.f32 %v5217_v42, %v4152_v14 }
 0x211   : > { %v798_v37 = vadd.f32 %v794_v0, %v5213_v29  ;;  %v822_v9 = vadd.f32 %v818_v47, %v5214_v7  ;;  %v866_v63 = vmul.f32 %v4002_v41, %v684_v32  ;;  %v4188_v38 = vmul.f32 %v768_v44, %v760_v45 }
 0x212   : > { %v844_v59 = vadd.f32 %v840_v57, %v5215_v11  ;;  %v846_v56 = vadd.f32 %v842_v6, %v5216_v1  ;;  %v872_v5 = vsub.f32 %v820_v55, %v796_v27  ;;  %v926_v0 = vmul.f32 %v4006_v13, %v4152_v14 }
 0x213   : > { %v874_v2 = vsub.f32 %v822_v9, %v798_v37  ;;  %v4192_v47 = vmul.f32 %v770_v19, %v762_v21  ;;  %v5218_v57 = vunpack.c.h.bf16 %v3845_v33  ;;  %v5219_v29 = vunpack.c.h.bf16 %v3915_v4 }
 0x214   : > { %v928_v7 = vmul.f32 %v4014_v23, %v684_v32  ;;  %v876_v11 = vmul.f32 %v872_v5, %v4159_v54  ;;  %v5220_v45 = vunpack.c.h.bf16 %v3854_v36  ;;  %v950_v13 = vmul.f32 %v4022_v24, %v4152_v14 }
 0x215   : > { %v868_v62 = vadd.f32 %v864_v51, %v5218_v57  ;;  %v870_v6 = vadd.f32 %v866_v63, %v5219_v29  ;;  %v878_v41 = vmul.f32 %v874_v2, %v4168_v50  ;;  %v5221_v9 = vunpack.c.h.bf16 %v3929_v8 }
 0x216   : > { %v930_v55 = vadd.f32 %v926_v0, %v5220_v45  ;;  %v952_v1 = vmul.f32 %v4030_v12, %v684_v32  ;;  %v880_v42 = vadd.f32 %v876_v11, %v796_v27  ;;  %v5222_v23 = vunpack.c.h.bf16 %v3942_v16 }
 0x217   : > { %v884_v21 = vsub.f32 %v868_v62, %v844_v59  ;;  %v886_v44 = vsub.f32 %v870_v6, %v846_v56  ;;  %v932_v19 = vadd.f32 %v928_v7, %v5221_v9  ;;  %v882_v51 = vadd.f32 %v878_v41, %v798_v37 }
 0x218   : > { %v954_v63 = vadd.f32 %v950_v13, %v5222_v23  ;;  %v974_v5 = vmul.f32 %v4034_v43, %v4152_v14  ;;  %v5223_v24 = vunpack.c.h.bf16 %v3945_v17  ;;  %v976_v62 = vmul.f32 %v4038_v10, %v684_v32 }
 0x219   : > { %v888_v2 = vmul.f32 %v884_v21, %v4159_v54  ;;  %v890_v0 = vmul.f32 %v886_v44, %v4168_v50  ;;  %v5224_v29 = vunpack.c.h.bf16 %v3957_v31  ;;  %v998_v27 = vmul.f32 %v4044_v22, %v4152_v14 }
 0x21a   : > { %v956_v57 = vadd.f32 %v952_v1, %v5223_v24  ;;  %v1000_v37 = vmul.f32 %v4066_v35, %v684_v32  ;;  %v1006_v6 = vsub.f32 %v954_v63, %v930_v55  ;;  %v5225_v11 = vunpack.c.h.bf16 %v3962_v48 }
 0x21b   : > { %v978_v12 = vadd.f32 %v974_v5, %v5224_v29  ;;  %v892_v7 = vadd.f32 %v888_v2, %v844_v59  ;;  %v894_v43 = vadd.f32 %v890_v0, %v846_v56  ;;  %v5226_v13 = vunpack.c.h.bf16 %v3975_v53 }
 0x21c   : > { %v980_v41 = vadd.f32 %v976_v62, %v5225_v11  ;;  %v1008_v45 = vsub.f32 %v956_v57, %v932_v19  ;;  %v5227_v10 = vunpack.c.h.bf16 %v3993_v18  ;;  %v1010_v9 = vmul.f32 %v1006_v6, %v4159_v54 }
 0x21d   : > { %v1002_v21 = vadd.f32 %v998_v27, %v5226_v13  ;;  %v710_v22 = vsub.f32 %v4138_v3, %v706_v15  ;;  %v896_v35 = vsub.f32 %v892_v7, %v880_v42  ;;  %v898_v14 = vsub.f32 %v894_v43, %v882_v51 }
 0x21e   : > { %v1004_v44 = vadd.f32 %v1000_v37, %v5227_v10  ;;  %v1012_v32 = vmul.f32 %v1008_v45, %v4168_v50  ;;  %v712_v59 = vsub.f32 %v4140_v61, %v708_v46  ;;  %v4239_v56 = vmul.f32 %v677_v49, %v4149_v20  ;;  %v5228_v49 = vld [vmem:[#allocation46_spill] sm:$0xff] }
 0x21f   : > { %v4242_v1 = vmul.f32 %v679_v58, %v4157_v39  ;;  %v1018_v23 = vsub.f32 %v1002_v21, %v978_v12  ;;  %v900_v3 = vmul.f32 %v896_v35, %v4188_v38  ;;  %v902_v15 = vmul.f32 %v898_v14, %v4192_v47  ;;  %v5229_v58 = vld [vmem:[#allocation58_spill] sm:$0xff] }
 0x220   : > { %v1020_v63 = vsub.f32 %v1004_v44, %v980_v41  ;;  %v1014_v5 = vadd.f32 %v1010_v9, %v930_v55  ;;  %v1016_v2 = vadd.f32 %v1012_v32, %v932_v19  ;;  %v718_v46 = vmul.f32 2.0, %v710_v22 }
 0x221   : > { %v1022_v0 = vmul.f32 %v1018_v23, %v4159_v54  ;;  %v720_v24 = vmul.f32 2.0, %v712_v59  ;;  %v904_v26 = vadd.f32 %v900_v3, %v880_v42  ;;  %v906_v20 = vadd.f32 %v902_v15, %v882_v51  ;;  %v5230_v42 = vld [vmem:[#allocation47_spill] sm:$0xff]  ;;  %v5236_v23 = vld [vmem:[#allocation49_spill] sm:$0xff]  ;;  %v5237_v3 = vld [vmem:[#allocation52_spill] sm:$0xff] }
 0x222   : > { %v1024_v61 = vmul.f32 %v1020_v63, %v4168_v50  ;;  %v745_v39 = vmul.f32 %v5228_v49, %v4122_v34  ;;  %v751_v57 = vfloor.f32 %v5229_v58  ;;  %v714_v27 = vmul.f32 %v710_v22, %v710_v22  ;;  %v5234_v22 = vld [vmem:[#allocation48_spill] sm:$0xff] }
 0x223   : > { %v1026_v62 = vadd.f32 %v1022_v0, %v978_v12  ;;  %v722_v37 = vsub.f32 3.0, %v718_v46  ;;  %v908_v6 = vpack.c.bf16 %v906_v20, %v904_v26  ;;  %v724_v55 = vsub.f32 3.0, %v720_v24  ;;  %v5239_v46 = vld [vmem:[#allocation50_spill] sm:$0xff] }
 0x224   : > { %v1028_v29 = vadd.f32 %v1024_v61, %v980_v41  ;;  %v749_v19 = vadd.f32 0.5, %v745_v39  ;;  %v755_v54 = vsub.f32 %v5229_v58, %v751_v57  ;;  %v716_v43 = vmul.f32 %v712_v59, %v712_v59  ;;  %v5232_v41 = vld [vmem:[#allocation42_spill] sm:$0xff] }
 0x225   : > { %v1030_v7 = vsub.f32 %v1026_v62, %v1014_v5  ;;  %v791_v51 = vmul.f32 %v5230_v42, %v4239_v56  ;;  %1096 = vmatprep.subr.bf16.mxu1 %v908_v6  ;;  %v4254_v11 = vmul.f32 %v722_v37, %v714_v27  ;;  %v5231_v12 = vunpack.c.l.bf16 %v3993_v18  ;;  %v5244_v37 = vld [vmem:[#allocation51_spill] sm:$0xff] }
 0x226   : > { %v1032_v50 = vsub.f32 %v1028_v29, %v1016_v2  ;;  %v753_v34 = vfloor.f32 %v749_v19  ;;  %v763_v45 = vmul.f32 2.0, %v755_v54  ;;  %v5233_v13 = vunpack.c.l.bf16 %v5232_v41  ;;  %v5248_v42 = vld [vmem:[#allocation43_spill] sm:$0xff] }
 0x227   : > { %v1034_v10 = vmul.f32 %v1030_v7, %v4188_v38  ;;  %v4262_v9 = vmul.f32 %v724_v55, %v716_v43  ;;  %v793_v35 = vmul.f32 %v5234_v22, %v4242_v1  ;;  %v5235_v32 = vunpack.c.l.bf16 %v3825_v25  ;;  %v5245_v55 = vld [vmem:[#allocation55_spill] sm:$0xff] }
 0x228   : > { %v995_v21 = vsub.f32 %v5233_v13, %v5231_v12  ;;  %v1036_v44 = vmul.f32 %v1032_v50, %v4192_v47  ;;  %v757_v14 = vsub.f32 %v749_v19, %v753_v34  ;;  %v815_v63 = vmul.f32 %v5236_v23, %v4239_v56 }
 0x229   : > { %v795_v59 = vadd.f32 %v791_v51, %v5235_v32  ;;  %v817_v15 = vmul.f32 %v5237_v3, %v4242_v1  ;;  %v1038_v0 = vadd.f32 %v1034_v10, %v1014_v5  ;;  %v5238_v38 = vunpack.c.l.bf16 %v3861_v40  ;;  %v5242_v5 = vld [vmem:[#allocation54_spill] sm:$0xff]  ;;  %v5254_v3 = vld [vmem:[#allocation45_spill] sm:$0xff] }
 0x22a   : > { %v1040_v61 = vadd.f32 %v1036_v44, %v1016_v2  ;;  %v839_v24 = vmul.f32 %v5239_v46, %v4239_v56  ;;  %v759_v26 = vmul.f32 %v755_v54, %v755_v54  ;;  %v765_v20 = vmul.f32 2.0, %v757_v14  ;;  %v5257_v46 = vld [vmem:[#allocation56_spill] sm:$0xff] }
 0x22b   : > { %v797_v47 = vadd.f32 %v793_v35, %v5238_v38  ;;  %v767_v49 = vsub.f32 3.0, %v763_v45  ;;  %v5240_v25 = vunpack.c.l.bf16 %v3832_v28  ;;  %v761_v57 = vmul.f32 %v757_v14, %v757_v14  ;;  %v5253_v14 = vld [vmem:[#allocation44_spill] sm:$0xff]  ;;  %v5256_v38 = vld [vmem:[#allocation53_spill] sm:$0xff] }
 0x22c   : > { %v1042_v58 = vpack.c.bf16 %v1040_v61, %v1038_v0  ;;  %v5241_v62 = vunpack.c.l.bf16 %v3880_v52  ;;  %v841_v2 = vmul.f32 %v5242_v5, %v4242_v1  ;;  %v5243_v40 = vunpack.c.l.bf16 %v3838_v30  ;;  %v5247_v52 = vld [vmem:[#allocation41_spill] sm:$0xff] }
 0x22d   : > { %v819_v39 = vadd.f32 %v815_v63, %v5240_v25  ;;  %v863_v6 = vmul.f32 %v5244_v37, %v4239_v56  ;;  %v865_v19 = vmul.f32 %v5245_v55, %v4242_v1  ;;  %v5246_v28 = vunpack.c.l.bf16 %v3895_v60 }
 0x22e   : > { %v821_v29 = vadd.f32 %v817_v15, %v5241_v62  ;;  %v843_v27 = vadd.f32 %v839_v24, %v5243_v40  ;;  %1322 = vmatprep.subr.bf16.mxu0 %v1042_v58  ;;  %v925_v43 = vmul.f32 %v5247_v52, %v4239_v56  ;;  %v927_v51 = vmul.f32 %v5248_v42, %v4242_v1 }
 0x22f   : > { %v871_v54 = vsub.f32 %v819_v39, %v795_v59  ;;  %v845_v7 = vadd.f32 %v841_v2, %v5246_v28  ;;  %v769_v30 = vsub.f32 3.0, %v765_v20  ;;  %v5249_v34 = vunpack.c.l.bf16 %v3845_v33  ;;  %v5259_v39 = vld [vmem:[#allocation57_spill] sm:$0xff] }
 0x230   : > { %v873_v50 = vsub.f32 %v821_v29, %v797_v47  ;;  %v5250_v12 = vunpack.c.l.bf16 %v3915_v4  ;;  %v5251_v60 = vunpack.c.l.bf16 %v3854_v36  ;;  %v5252_v22 = vunpack.c.l.bf16 %v3929_v8 }
 0x231   : > { %v867_v45 = vadd.f32 %v863_v6, %v5249_v34  ;;  %v875_v13 = vmul.f32 %v871_v54, %v4254_v11  ;;  %v949_v32 = vmul.f32 %v5253_v14, %v4239_v56  ;;  %v951_v4 = vmul.f32 %v5254_v3, %v4242_v1  ;;  %v2745_v14 = vld [vmem:[#allocation12 + $0x10] sm:$0xff]  }
 0x232   : > { %v869_v41 = vadd.f32 %v865_v19, %v5250_v12  ;;  %v877_v10 = vmul.f32 %v873_v50, %v4262_v9  ;;  %v929_v44 = vadd.f32 %v925_v43, %v5251_v60  ;;  %v931_v35 = vadd.f32 %v927_v51, %v5252_v22  ;;  %v2741_v12 = vld [vmem:[#allocation12] sm:$0xff]   ;;  %v2743_v22 = vld [vmem:[#allocation12 + $0x8] sm:$0xff]  }
 0x233   : > { %v879_v23 = vadd.f32 %v875_v13, %v795_v59  ;;  %v883_v63 = vsub.f32 %v867_v45, %v843_v27  ;;  %v5255_v0 = vunpack.c.l.bf16 %v3942_v16  ;;  %v973_v36 = vmul.f32 %v5256_v38, %v4239_v56 }
 0x234   : > { %v885_v33 = vsub.f32 %v869_v41, %v845_v7  ;;  %v881_v15 = vadd.f32 %v877_v10, %v797_v47  ;;  %v975_v8 = vmul.f32 %v5257_v46, %v4242_v1  ;;  %v5258_v59 = vunpack.c.l.bf16 %v3945_v17 }
 0x235   : > { %v953_v61 = vadd.f32 %v949_v32, %v5255_v0  ;;  %v887_v24 = vmul.f32 %v883_v63, %v4254_v11  ;;  %v997_v58 = vmul.f32 %v5259_v39, %v4239_v56  ;;  %v5260_v47 = vunpack.c.l.bf16 %v3957_v31  ;;  %v2746_v32 = vld [vmem:[#allocation14 + $0x10] sm:$0xff]   ;;  %v2748_v63 = vld [vmem:[#allocation14 + $0x18] sm:$0xff]   ;;  %v1422_v0 = vpop.permute.xlu1 %1421 }
 0x236   : > { %v889_v20 = vmul.f32 %v885_v33, %v4262_v9  ;;  %v955_v25 = vadd.f32 %v951_v4, %v5258_v59  ;;  %v5261_v62 = vunpack.c.l.bf16 %v3962_v48  ;;  %v999_v5 = vmul.f32 %v995_v21, %v4242_v1 }
 0x237   : > { %v977_v16 = vadd.f32 %v973_v36, %v5260_v47  ;;  %v1005_v2 = vsub.f32 %v953_v61, %v929_v44  ;;  %v891_v40 = vadd.f32 %v887_v24, %v843_v27  ;;  %v5262_v6 = vunpack.c.l.bf16 %v3975_v53 }
 0x238   : > { %v979_v29 = vadd.f32 %v975_v8, %v5261_v62  ;;  %v893_v37 = vadd.f32 %v889_v20, %v845_v7  ;;  %v1007_v19 = vsub.f32 %v955_v25, %v931_v35  ;;  %v771_v17 = vmul.f32 %v767_v49, %v759_v26 }
 0x239   : > { %v1001_v55 = vadd.f32 %v997_v58, %v5262_v6  ;;  %v773_v54 = vmul.f32 %v769_v30, %v761_v57  ;;  %v5263_v28 = vunpack.c.l.bf16 %v3993_v18  ;;  %v1009_v31 = vmul.f32 %v1005_v2, %v4254_v11  ;;  %v1427_v47 = vpop.permute.xlu1 %1426 }
 0x23a   : > { %v895_v50 = vsub.f32 %v891_v40, %v879_v23  ;;  %v897_v52 = vsub.f32 %v893_v37, %v881_v15  ;;  %v1011_v48 = vmul.f32 %v1007_v19, %v4262_v9  ;;  %v1432_v37 = vpop.permute.xlu0 %1431 }
 0x23b   : > { %v1003_v56 = vadd.f32 %v999_v5, %v5263_v28  ;;  %v1017_v43 = vsub.f32 %v1001_v55, %v977_v16  ;;  %v1013_v7 = vadd.f32 %v1009_v31, %v929_v44 }
 0x23c   : > { %v899_v21 = vmul.f32 %v895_v50, %v771_v17  ;;  %v901_v27 = vmul.f32 %v897_v52, %v773_v54  ;;  %v1015_v42 = vadd.f32 %v1011_v48, %v931_v35  ;;  %v2744_v35 = vld [vmem:[#allocation14 + $0x8] sm:$0xff]  }
 0x23d   : > { %v1019_v1 = vsub.f32 %v1003_v56, %v979_v29  ;;  %v1021_v53 = vmul.f32 %v1017_v43, %v4254_v11  ;;  %v5264_v11 = vmov 0  }
 0x23e   : > { %v903_v49 = vadd.f32 %v899_v21, %v879_v23  ;;  %v905_v57 = vadd.f32 %v901_v27, %v881_v15  ;;  %v2747_v23 = vld [vmem:[#allocation12 + $0x18] sm:$0xff]  }
 0x23f   : > { %v1023_v26 = vmul.f32 %v1019_v1, %v4262_v9  ;;  %v1025_v18 = vadd.f32 %v1021_v53, %v977_v16  ;;  %v2742_v9 = vld [vmem:[#allocation14] sm:$0xff]  }
 0x240   : > { %v907_v30 = vpack.c.bf16 %v905_v57, %v903_v49 }
 0x241   : > { %v1027_v51 = vadd.f32 %v1023_v26, %v979_v29  ;;  %v1029_v34 = vsub.f32 %v1025_v18, %v1013_v7 }
 0x242   : > { %1097 = vmatpush1.bf16.msra.mxu1 %v907_v30 }
 0x243   : > { %v1031_v45 = vsub.f32 %v1027_v51, %v1015_v42  ;;  %v1033_v41 = vmul.f32 %v1029_v34, %v771_v17 }
 0x245   : > { %v1035_v13 = vmul.f32 %v1031_v45, %v773_v54  ;;  %v1037_v10 = vadd.f32 %v1033_v41, %v1013_v7  ;;  %2520 = vmatmul.mubr.msk.bf16.vlgmr.msra.gmra.mrb[0].mxu1 %vm1083_vm2, %v2741_v12  ;;  %v1437_v7 = vpop.permute.xlu1 %1436  ;;  %v1442_v45 = vpop.permute.xlu0 %1441 }
 0x246   : > { %1138 = vmatprep.mubr.bf16.mxu1 %v5264_v11 }
 0x247   : > { %v1039_v60 = vadd.f32 %v1035_v13, %v1015_v42 }
 0x249   : > { %v1041_v44 = vpack.c.bf16 %v1039_v60, %v1037_v10 }
 0x24b   : > { %1323 = vmatpush1.bf16.msra.mxu0 %v1041_v44 }
 0x24d   : > { %2521 = vmatmul.mubr.msk.bf16.gmra.mrb[4].mxu1 %vm1083_vm2, %v2743_v22 }
 0x24e   : > { %2537 = vmatmul.mubr.msk.bf16.vlgmr.msra.gmra.mrb[0].mxu0 %vm1083_vm2, %v2742_v9  ;;  %1148 = vmatprep.mubr.bf16.mxu1 %v5264_v11 }
 0x24f   : > { %1364 = vmatprep.mubr.bf16.mxu0 %v5264_v11 }
 0x255   : > { %2522 = vmatmul.mubr.msk.bf16.gmra.mrb[8].mxu1 %vm1083_vm2, %v2745_v14 }
 0x256   : > { %2538 = vmatmul.mubr.msk.bf16.gmra.mrb[4].mxu0 %vm1083_vm2, %v2744_v35  ;;  %1158 = vmatprep.mubr.bf16.mxu1 %v5264_v11 }
 0x257   : > { %1374 = vmatprep.mubr.bf16.mxu0 %v5264_v11 }
 0x25d   : > { %2523 = vmatmul.mubr.msk.bf16.gmra.mrb[12].mxu1 %vm1083_vm2, %v2747_v23 }
 0x25e   : > { %2539 = vmatmul.mubr.msk.bf16.gmra.mrb[8].mxu0 %vm1083_vm2, %v2746_v32  ;;  %1861 = vmatprep.mubr.bf16.mxu1 %v5264_v11 }
 0x25f   : > { %1384 = vmatprep.mubr.bf16.mxu0 %v5264_v11 }
 0x266   : > { %2540 = vmatmul.mubr.msk.bf16.gmra.mrb[12].mxu0 %vm1083_vm2, %v2748_v63 }
 0x318   : > { %v1130_v33 = vpop.f32.mrb[0].mxu1 }
 0x319   : > { %v1132_v3 = vpop.f32.mrb[1].mxu1 }
 0x31a   : > { %v1134_v4 = vpop.f32.mrb[2].mxu1 }
 0x31b   : > { %v1136_v15 = vpop.f32.mrb[3].mxu1 }
 0x320   : > { %v1140_v46 = vpop.f32.mrb[4].mxu1 }
 0x321   : > { %v1356_v61 = vpop.f32.mrb[0].mxu0  ;;  %v1142_v20 = vpop.f32.mrb[5].mxu1 }
 0x322   : > { %v2559_v38 = vadd.f32 %v1356_v61, %v1130_v33  ;;  %v1358_v36 = vpop.f32.mrb[1].mxu0  ;;  %v1144_v58 = vpop.f32.mrb[6].mxu1 }
 0x323   : > { %v2560_v8 = vadd.f32 %v1358_v36, %v1132_v3  ;;  %v1360_v24 = vpop.f32.mrb[2].mxu0  ;;  %v1146_v62 = vpop.f32.mrb[7].mxu1 }
 0x324   : > { %v4348_v59 = vadd.f32 %v2559_v38, %v1422_v0  ;;  %v2561_v25 = vadd.f32 %v1360_v24, %v1134_v4  ;;  %v1362_v39 = vpop.f32.mrb[3].mxu0  ;;  %v1447_v61 = vpop.permute.xlu1 %1446 }
 0x325   : > { %v2562_v16 = vadd.f32 %v1362_v39, %v1136_v15  ;;  %v4359_v19 = vadd.f32 %v2560_v8, %v1422_v0 }
 0x326   : > { %v4351_v29 = vmul.f32 100.0, %v4348_v59  ;;  %v4353_v5 = vadd.f32 %v2561_v25, %v1427_v47 }
 0x327   : > { %v4365_v26 = vmul.f32 100.0, %v4359_v19  ;;  %v4372_v18 = vadd.f32 %v2562_v16, %v1427_v47 }
 0x328   : > { %v1507_v2 = vmin.f32 %v4351_v29, 20.0  ;;  %v4357_v40 = vmul.f32 100.0, %v4353_v5  ;;  %v1150_v56 = vpop.f32.mrb[8].mxu1  ;;  %vm1491_vm5 = vcmp.gt.f32.partialorder %v4351_v29, 20.0 }
 0x329   : > { %v1366_v6 = vpop.f32.mrb[4].mxu0  ;;  %v1152_v52 = vpop.f32.mrb[9].mxu1  ;;  %v1508_v41 = vmin.f32 %v4365_v26, 20.0  ;;  %v4383_v22 = vmul.f32 100.0, %v4372_v18  ;;  %vm1492_vm15 = vcmp.gt.f32.partialorder %v4365_v26, 20.0 }
 0x32a   : > { %v1523_v55 = vmul.f32 1.442695, %v1507_v2  ;;  %v1509_v17 = vmin.f32 %v4357_v40, 20.0  ;;  %v2563_v54 = vadd.f32 %v1366_v6, %v1140_v46  ;;  %v1368_v28 = vpop.f32.mrb[5].mxu0  ;;  %v1154_v27 = vpop.f32.mrb[10].mxu1  ;;  %vm1493_vm3 = vcmp.gt.f32.partialorder %v4357_v40, 20.0 }
 0x32b   : > { %v2564_v31 = vadd.f32 %v1368_v28, %v1142_v20  ;;  %v1370_v50 = vpop.f32.mrb[6].mxu0  ;;  %v1156_v42 = vpop.f32.mrb[11].mxu1  ;;  %v1525_v8 = vmul.f32 1.442695, %v1508_v41  ;;  %v1510_v39 = vmin.f32 %v4383_v22, 20.0  ;;  %vm1494_vm0 = vcmp.gt.f32.partialorder %v4383_v22, 20.0 }
 0x32c   : > { %2753 = vpow2.f32 %v1523_v55  ;;  %v1527_v48 = vmul.f32 1.442695, %v1509_v17  ;;  %v4362_v43 = vadd.f32 %v2563_v54, %v1432_v37  ;;  %v2565_v1 = vadd.f32 %v1370_v50, %v1144_v58  ;;  %v1372_v21 = vpop.f32.mrb[7].mxu0 }
 0x32d   : > { %v2566_v53 = vadd.f32 %v1372_v21, %v1146_v62  ;;  %v4374_v51 = vadd.f32 %v2564_v31, %v1432_v37  ;;  %v1529_v54 = vmul.f32 1.442695, %v1510_v39 }
 0x32e   : > { %2755 = vpow2.f32 %v1527_v48  ;;  %v4368_v49 = vmul.f32 100.0, %v4362_v43  ;;  %v4370_v57 = vadd.f32 %v2565_v1, %v1437_v7 }
 0x32f   : > { %v4386_v35 = vmul.f32 100.0, %v4374_v51  ;;  %v4388_v14 = vadd.f32 %v2566_v53, %v1437_v7 }
 0x330   : > { %v1511_v30 = vmin.f32 %v4368_v49, 20.0  ;;  %v4378_v34 = vmul.f32 100.0, %v4370_v57  ;;  %v1160_v9 = vpop.f32.mrb[12].mxu1  ;;  %vm1495_vm8 = vcmp.gt.f32.partialorder %v4368_v49, 20.0 }
 0x331   : > { %v1376_v12 = vpop.f32.mrb[8].mxu0  ;;  %v1162_v63 = vpop.f32.mrb[13].mxu1  ;;  %v1512_v16 = vmin.f32 %v4386_v35, 20.0  ;;  %v4407_v62 = vmul.f32 100.0, %v4388_v14 }
 0x332   : > { %v1531_v13 = vmul.f32 1.442695, %v1511_v30  ;;  %v1513_v10 = vmin.f32 %v4378_v34, 20.0  ;;  %v2567_v60 = vadd.f32 %v1376_v12, %v1150_v56  ;;  %v1378_v44 = vpop.f32.mrb[9].mxu0  ;;  %v1164_v0 = vpop.f32.mrb[14].mxu1  ;;  %vm1497_vm11 = vcmp.gt.f32.partialorder %v4378_v34, 20.0 }
 0x333   : > { %v2568_v32 = vadd.f32 %v1378_v44, %v1152_v52  ;;  %v1380_v23 = vpop.f32.mrb[10].mxu0  ;;  %v1166_v36 = vpop.f32.mrb[15].mxu1  ;;  %v1533_v31 = vmul.f32 1.442695, %v1512_v16  ;;  %v1514_v50 = vmin.f32 %v4407_v62, 20.0 }
 0x334   : > { %2757 = vpow2.f32 %v1531_v13  ;;  %v1535_v33 = vmul.f32 1.442695, %v1513_v10  ;;  %v4390_v3 = vadd.f32 %v2567_v60, %v1442_v45  ;;  %v2569_v4 = vadd.f32 %v1380_v23, %v1154_v27  ;;  %v1382_v15 = vpop.f32.mrb[11].mxu0  ;;  %v1452_v13 = vpop.permute.xlu0 %1451 }
 0x335   : > { %v2570_v38 = vadd.f32 %v1382_v15, %v1156_v42  ;;  %v4401_v58 = vadd.f32 %v2568_v32, %v1442_v45  ;;  %v1537_v32 = vmul.f32 1.442695, %v1514_v50 }
 0x336   : > { %v4392_v46 = vpop.eup %2753  ;;  %2759 = vpow2.f32 %v1535_v33  ;;  %v4395_v24 = vmul.f32 100.0, %v4390_v3  ;;  %v4397_v20 = vadd.f32 %v2569_v4, %v1447_v61 }
 0x337   : > { %v1555_v25 = vadd.f32 1.0, %v4392_v46  ;;  %v4415_v28 = vmul.f32 100.0, %v4401_v58  ;;  %v1558_v1 = vmul.f32 -0.5, %v4392_v46  ;;  %v4420_v21 = vadd.f32 %v2570_v38, %v1447_v61 }
 0x338   : > { %v4403_v47 = vpop.eup %2755  ;;  %v1515_v2 = vmin.f32 %v4395_v24, 20.0  ;;  %v4411_v37 = vmul.f32 100.0, %v4397_v20  ;;  %vm1499_vm12 = vcmp.gt.f32.partialorder %v4395_v24, 20.0 }
 0x339   : > { %2761 = vlog2.f32 %v1555_v25  ;;  %v1573_v6 = vadd.f32 1.0, %v4403_v47  ;;  %v1386_v55 = vpop.f32.mrb[12].mxu0  ;;  %v1576_v30 = vmul.f32 -0.5, %v4403_v47  ;;  %v1516_v60 = vmin.f32 %v4415_v28, 20.0 }
 0x33a   : > { %2763 = vpow2.f32 %v1525_v8  ;;  %v1539_v17 = vmul.f32 1.442695, %v1515_v2  ;;  %v1388_v56 = vpop.f32.mrb[13].mxu0  ;;  %v1517_v52 = vmin.f32 %v4411_v37, 20.0  ;;  %v2571_v27 = vadd.f32 %v1386_v55, %v1160_v9  ;;  %v1457_v55 = vpop.permute.xlu1 %1456 }
 0x33b   : > { %2765 = vlog2.f32 %v1573_v6  ;;  %v1390_v48 = vpop.f32.mrb[14].mxu0  ;;  %v2572_v7 = vadd.f32 %v1388_v56, %v1162_v63  ;;  %v1559_v23 = vadd.f32 1.0, %v1558_v1  ;;  %v4433_v33 = vmul.f32 100.0, %v4420_v21 }
 0x33c   : > { %2767 = vpow2.f32 %v1539_v17  ;;  %v1392_v53 = vpop.f32.mrb[15].mxu0  ;;  %v1543_v45 = vmul.f32 1.442695, %v1517_v52  ;;  %v2573_v12 = vadd.f32 %v1390_v48, %v1164_v0  ;;  %v4429_v9 = vadd.f32 %v2571_v27, %v1452_v13 }
 0x33d   : > { %v2574_v41 = vadd.f32 %v1392_v53, %v1166_v36  ;;  %2769 = vpow2.f32 %v1529_v54  ;;  %v1577_v4 = vadd.f32 1.0, %v1576_v30  ;;  %v1579_v15 = vand.u32 2147483647, %v4403_v47 }
 0x33e   : > { %v4422_v42 = vpop.eup %2757  ;;  %2771 = vpow2.f32 %v1543_v45  ;;  %v1541_v61 = vmul.f32 1.442695, %v1516_v60  ;;  %v4437_v38 = vmul.f32 100.0, %v4429_v9  ;;  %v4439_v36 = vadd.f32 %v2572_v7, %v1452_v13 }
 0x33f   : > { %v1591_v10 = vadd.f32 1.0, %v4422_v42  ;;  %v1561_v25 = vand.u32 2147483647, %v4392_v46  ;;  %v1594_v39 = vmul.f32 -0.5, %v4422_v42  ;;  %v1560_v2 = vmul.f32 %v4392_v46, %v1559_v23 }
 0x340   : > { %v4427_v44 = vpop.eup %2759  ;;  %v1597_v6 = vand.u32 2147483647, %v4422_v42  ;;  %v1518_v17 = vmin.f32 %v4433_v33, 20.0  ;;  %v1519_v54 = vmin.f32 %v4437_v38, 20.0  ;;  %v1578_v52 = vmul.f32 %v4403_v47, %v1577_v4 }
 0x341   : > { %2773 = vlog2.f32 %v1591_v10  ;;  %v1609_v63 = vadd.f32 1.0, %v4427_v44  ;;  %v4453_v48 = vadd.f32 %v2573_v12, %v1457_v55  ;;  %vm4455_vm4 = vcmp.lt.f32.partialorder %v1579_v15, 0.0004427343 }
 0x342   : > { %2775 = vpow2.f32 %v1533_v31  ;;  %v4461_v27 = vmul.f32 100.0, %v4439_v36  ;;  %v1595_v53 = vadd.f32 1.0, %v1594_v39  ;;  %v1612_v30 = vmul.f32 -0.5, %v4427_v44 }
 0x343   : > { %v2762_v0 = vpop.eup %2761  ;;  %2777 = vlog2.f32 %v1609_v63  ;;  %v1547_v45 = vmul.f32 1.442695, %v1519_v54  ;;  %vm4469_vm6 = vcmp.lt.f32.partialorder %v1561_v25, 0.0004427343  ;;  %vm4473_vm7 = vcmp.lt.f32.partialorder %v1597_v6, 0.0004427343 }
 0x344   : > { %v4441_v8 = vpop.eup %2763  ;;  %2779 = vpow2.f32 %v1537_v32  ;;  %v1557_v31 = vmul.f32 0.6931472, %v2762_v0  ;;  %v1545_v10 = vmul.f32 1.442695, %v1518_v17  ;;  %v4480_v23 = vmul.f32 100.0, %v4453_v48 }
 0x345   : > { %v2766_v16 = vpop.eup %2765  ;;  %2781 = vpow2.f32 %v1541_v61  ;;  %v4482_v63 = vadd.f32 %v2574_v41, %v1457_v55  ;;  %v1520_v25 = vmin.f32 %v4461_v27, 20.0  ;;  %v1596_v6 = vmul.f32 %v4422_v42, %v1595_v53 }
 0x346   : > { %v4449_v56 = vpop.eup %2767  ;;  %v1575_v50 = vmul.f32 0.6931472, %v2766_v16  ;;  %v1563_v32 = vsel %vm4469_vm6, %v1560_v2, %v1557_v31  ;;  %v1613_v17 = vadd.f32 1.0, %v1612_v30  ;;  %v1615_v2 = vand.u32 2147483647, %v4427_v44 }
 0x347   : > { %v1627_v46 = vadd.f32 1.0, %v4449_v56  ;;  %v4466_v47 = vpop.eup %2769  ;;  %v1630_v0 = vmul.f32 -0.5, %v4449_v56  ;;  %v1700_v31 = vmul.f32 0.01, %v1563_v32  ;;  %v1521_v41 = vmin.f32 %v4480_v23, 20.0 }
 0x348   : > { %v1581_v7 = vsel %vm4455_vm4, %v1578_v52, %v1575_v50  ;;  %v2772_v60 = vpop.eup %2771  ;;  %v4492_v55 = vmul.f32 100.0, %v4482_v63  ;;  %v1633_v52 = vand.u32 2147483647, %v4449_v56  ;;  %v1564_v42 = vadd.f32 1.0, %v4441_v8 }
 0x349   : > { %2783 = vlog2.f32 %v1627_v46  ;;  %v1702_v15 = vmul.f32 0.01, %v1581_v7  ;;  %v1645_v61 = vadd.f32 1.0, %v2772_v60  ;;  %v1648_v1 = vmul.f32 -0.5, %v2772_v60 }
 0x34a   : > { %2785 = vpow2.f32 %v1547_v45  ;;  %v1631_v7 = vadd.f32 1.0, %v1630_v0  ;;  %v1549_v53 = vmul.f32 1.442695, %v1520_v25  ;;  %v1551_v30 = vmul.f32 1.442695, %v1521_v41 }
 0x34b   : > { %v2774_v4 = vpop.eup %2773  ;;  %2787 = vlog2.f32 %v1645_v61  ;;  %v4502_v46 = vsel %vm1493_vm3, %v4353_v5, %v1702_v15  ;;  %v1651_v32 = vand.u32 2147483647, %v2772_v60  ;;  %vm4509_vm9 = vcmp.lt.f32.partialorder %v1615_v2, 0.0004427343 }
 0x34c   : > { %v4486_v39 = vpop.eup %2775  ;;  %v1593_v16 = vmul.f32 0.6931472, %v2774_v4  ;;  %2789 = vpow2.f32 %v1545_v10  ;;  %v1614_v10 = vmul.f32 %v4427_v44, %v1613_v17  ;;  %v1522_v5 = vmin.f32 %v4492_v55, 20.0 }
 0x34d   : > { %v2778_v54 = vpop.eup %2777  ;;  %2791 = vlog2.f32 %v1564_v42  ;;  %v4517_v40 = vsel %vm1491_vm5, %v4348_v59, %v1700_v31  ;;  %vm4519_vm10 = vcmp.lt.f32.partialorder %v1633_v52, 0.0004427343  ;;  %v1649_v15 = vadd.f32 1.0, %v1648_v1 }
 0x34e   : > { %v4494_v50 = vpop.eup %2779  ;;  %v1599_v45 = vsel %vm4473_vm7, %v1596_v6, %v1593_v16  ;;  %v1611_v12 = vmul.f32 0.6931472, %v2778_v54  ;;  %2793 = vpow2.f32 %v1551_v30  ;;  %v1582_v0 = vadd.f32 1.0, %v4466_v47 }
 0x34f   : > { %v4506_v4 = vpop.eup %2781  ;;  %v1704_v25 = vmul.f32 0.01, %v1599_v45  ;;  %v1632_v16 = vmul.f32 %v4449_v56, %v1631_v7  ;;  %2795 = vpow2.f32 %v1549_v53  ;;  %v1740_v6 = vpack.c.bf16 %v4502_v46, %v4517_v40 }
 0x350   : > { %v1617_v59 = vsel %vm4509_vm9, %v1614_v10, %v1611_v12  ;;  %vm4531_vm13 = vcmp.lt.f32.partialorder %v1651_v32, 0.0004427343  ;;  %v1567_v54 = vmul.f32 -0.5, %v4441_v8  ;;  %v1553_v41 = vmul.f32 1.442695, %v1522_v5 }
 0x351   : > { %2797 = vlog2.f32 %v1582_v0  ;;  %v1585_v56 = vmul.f32 -0.5, %v4466_v47  ;;  %v1650_v1 = vmul.f32 %v2772_v60, %v1649_v15  ;;  %v1600_v7 = vadd.f32 1.0, %v4486_v39 }
 0x352   : > { %v4543_v30 = vsel %vm1495_vm8, %v4362_v43, %v1704_v25  ;;  %v1706_v45 = vmul.f32 0.01, %v1617_v59  ;;  %v1570_v12 = vand.u32 2147483647, %v4441_v8  ;;  %vm1501_vm14 = vcmp.gt.f32.partialorder %v4411_v37, 20.0 }
 0x353   : > { %v2784_v44 = vpop.eup %2783  ;;  %v1568_v61 = vadd.f32 1.0, %v1567_v54  ;;  %v1588_v60 = vand.u32 2147483647, %v4466_v47  ;;  %v1586_v13 = vadd.f32 1.0, %v1585_v56  ;;  %v1618_v49 = vadd.f32 1.0, %v4494_v50 }
 0x354   : > { %v2786_v29 = vpop.eup %2785  ;;  %v1629_v17 = vmul.f32 0.6931472, %v2784_v44  ;;  %v1603_v25 = vmul.f32 -0.5, %v4486_v39  ;;  %v1621_v54 = vmul.f32 -0.5, %v4494_v50  ;;  %v4563_v2 = vsel %vm1497_vm11, %v4370_v57, %v1706_v45 }
 0x355   : > { %v1663_v31 = vadd.f32 1.0, %v2786_v29  ;;  %v1666_v42 = vmul.f32 -0.5, %v2786_v29  ;;  %v2788_v53 = vpop.eup %2787  ;;  %v1669_v44 = vand.u32 2147483647, %v2786_v29  ;;  %vm4567_vm1 = vcmp.lt.f32.partialorder %v1570_v12, 0.0004427343 }
 0x356   : > { %v1635_v52 = vsel %vm4519_vm10, %v1632_v16, %v1629_v17  ;;  %v4546_v32 = vpop.eup %2789  ;;  %v1647_v10 = vmul.f32 0.6931472, %v2788_v53  ;;  %v1606_v17 = vand.u32 2147483647, %v4486_v39  ;;  %v1587_v34 = vmul.f32 %v4466_v47, %v1586_v13 }
 0x357   : > { %2799 = vlog2.f32 %v1663_v31  ;;  %v1708_v5 = vmul.f32 0.01, %v1635_v52  ;;  %v2792_v43 = vpop.eup %2791  ;;  %v1667_v0 = vadd.f32 1.0, %v1666_v42  ;;  %vm4579_vm2 = vcmp.lt.f32.partialorder %v1588_v60, 0.0004427343 }
 0x358   : > { %2801 = vlog2.f32 %v1600_v7  ;;  %v1653_v15 = vsel %vm4531_vm13, %v1650_v1, %v1647_v10  ;;  %v4554_v16 = vpop.eup %2793  ;;  %v1566_v59 = vmul.f32 0.6931472, %v2792_v43  ;;  %vm4583_vm3 = vcmp.lt.f32.partialorder %v1669_v44, 0.0004427343 }
 0x359   : > { %2803 = vpow2.f32 %v1553_v41  ;;  %v1681_v31 = vadd.f32 1.0, %v4554_v16  ;;  %v1569_v41 = vmul.f32 %v4441_v8, %v1568_v61  ;;  %v4571_v52 = vpop.eup %2795  ;;  %v4576_v1 = vsel %vm1499_vm12, %v4390_v3, %v1708_v5 }
 0x35a   : > { %2805 = vlog2.f32 %v1618_v49  ;;  %v1710_v42 = vmul.f32 0.01, %v1653_v15  ;;  %v1668_v7 = vmul.f32 %v2786_v29, %v1667_v0  ;;  %v1604_v45 = vadd.f32 1.0, %v1603_v25 }
 0x35b   : > { %2807 = vlog2.f32 %v1681_v31  ;;  %v1572_v53 = vsel %vm4567_vm1, %v1569_v41, %v1566_v59  ;;  %v2798_v24 = vpop.eup %2797  ;;  %vm4589_vm4 = vcmp.lt.f32.partialorder %v1606_v17, 0.0004427343  ;;  %v1622_v47 = vadd.f32 1.0, %v1621_v54 }
 0x35c   : > { %v1742_v12 = vpack.c.bf16 %v4563_v2, %v4543_v30  ;;  %v1636_v29 = vadd.f32 1.0, %v4506_v4  ;;  %v1684_v10 = vmul.f32 -0.5, %v4554_v16  ;;  %v1584_v61 = vmul.f32 0.6931472, %v2798_v24 }
 0x35d   : > { %v1624_v60 = vand.u32 2147483647, %v4494_v50  ;;  %v1654_v5 = vadd.f32 1.0, %v4546_v32  ;;  %v4602_v49 = vsel %vm1501_vm14, %v4397_v20, %v1710_v42  ;;  %v1687_v43 = vand.u32 2147483647, %v4554_v16 }
 0x35e   : > { %v1701_v15 = vmul.f32 0.01, %v1572_v53  ;;  %2809 = vlog2.f32 %v1636_v29  ;;  %vm1496_vm5 = vcmp.gt.f32.partialorder %v4386_v35, 20.0  ;;  %vm1498_vm6 = vcmp.gt.f32.partialorder %v4407_v62, 20.0 }
 0x35f   : > { %v1590_v44 = vsel %vm4579_vm2, %v1587_v34, %v1584_v61  ;;  %v1605_v25 = vmul.f32 %v4486_v39, %v1604_v45  ;;  %v1639_v59 = vmul.f32 -0.5, %v4506_v4  ;;  %2811 = vlog2.f32 %v1654_v5 }
 0x360   : > { %v1703_v17 = vmul.f32 0.01, %v1590_v44  ;;  %v1623_v31 = vmul.f32 %v4494_v50, %v1622_v47  ;;  %v1685_v41 = vadd.f32 1.0, %v1684_v10  ;;  %v1657_v56 = vmul.f32 -0.5, %v4546_v32 }
 0x361   : > { %v2800_v13 = vpop.eup %2799  ;;  %v1744_v42 = vpack.c.bf16 %v4602_v49, %v4576_v1  ;;  %v1672_v34 = vadd.f32 1.0, %v4571_v52  ;;  %vm1503_vm7 = vcmp.gt.f32.partialorder %v4437_v38, 20.0  ;;  %vm1505_vm8 = vcmp.gt.f32.partialorder %v4480_v23, 20.0  ;;  %v2750_v1 = vld [vmem:[#allocation17 + $0x8] sm:$0xff]  }
 0x362   : > { %v2802_v0 = vpop.eup %2801  ;;  %v1665_v20 = vmul.f32 0.6931472, %v2800_v13  ;;  %v1717_v39 = vsel %vm1492_vm15, %v4359_v19, %v1701_v15  ;;  %v1719_v50 = vsel %vm1494_vm0, %v4372_v18, %v1703_v17  ;;  %vm4628_vm9 = vcmp.lt.f32.partialorder %v1624_v60, 0.0004427343 }
 0x363   : > { %v4611_v37 = vpop.eup %2803  ;;  %v1602_v54 = vmul.f32 0.6931472, %v2802_v0  ;;  %v1741_v24 = vpack.c.bf16 %v1719_v50, %v1717_v39  ;;  %v1642_v29 = vand.u32 2147483647, %v4506_v4  ;;  %2813 = vlog2.f32 %v1672_v34 }
 0x364   : > { %v2806_v57 = vpop.eup %2805  ;;  %v1671_v26 = vsel %vm4583_vm3, %v1668_v7, %v1665_v20  ;;  %v1640_v10 = vadd.f32 1.0, %v1639_v59  ;;  %v1690_v22 = vadd.f32 1.0, %v4611_v37  ;;  %v1686_v3 = vmul.f32 %v4554_v16, %v1685_v41 }
 0x365   : > { %v1608_v53 = vsel %vm4589_vm4, %v1605_v25, %v1602_v54  ;;  %v1620_v47 = vmul.f32 0.6931472, %v2806_v57  ;;  %v2808_v18 = vpop.eup %2807  ;;  %1829 = vmatprep.subr.bf16.mxu1 %v1741_v24  ;;  %v1658_v60 = vadd.f32 1.0, %v1657_v56  ;;  %v1660_v5 = vand.u32 2147483647, %v4546_v32 }
 0x366   : > { %v1705_v19 = vmul.f32 0.01, %v1608_v53  ;;  %v1683_v13 = vmul.f32 0.6931472, %v2808_v18  ;;  %1830 = vmatpush1.bf16.msra.mxu1 %v1740_v6  ;;  %v1675_v8 = vmul.f32 -0.5, %v4571_v52  ;;  %2815 = vlog2.f32 %v1690_v22 }
 0x367   : > { %v1626_v61 = vsel %vm4628_vm9, %v1623_v31, %v1620_v47  ;;  %v1712_v15 = vmul.f32 0.01, %v1671_v26  ;;  %vm1688_vm10 = vcmp.lt.f32.partialorder %v1687_v43, 0.0004427343  ;;  %vm4644_vm11 = vcmp.lt.f32.partialorder %v1642_v29, 0.0004427343  ;;  %v1764_v47 = vpop.permute.xlu1 %1763 }
 0x368   : > { %v1707_v7 = vmul.f32 0.01, %v1626_v61  ;;  %v2810_v0 = vpop.eup %2809  ;;  %v1689_v44 = vsel %vm1688_vm10, %v1686_v3, %v1683_v13  ;;  %v1721_v25 = vsel %vm1496_vm5, %v4374_v51, %v1705_v19  ;;  %v1641_v40 = vmul.f32 %v4506_v4, %v1640_v10 }
 0x369   : > { %v2812_v6 = vpop.eup %2811  ;;  %v1714_v59 = vmul.f32 0.01, %v1689_v44  ;;  %v1638_v43 = vmul.f32 0.6931472, %v2810_v0  ;;  %v1693_v17 = vmul.f32 -0.5, %v4611_v37  ;;  %v1659_v31 = vmul.f32 %v4546_v32, %v1658_v60 }
 0x36a   : > { %v1723_v46 = vsel %vm1498_vm6, %v4388_v14, %v1707_v7  ;;  %v1656_v54 = vmul.f32 0.6931472, %v2812_v6  ;;  %vm1661_vm12 = vcmp.lt.f32.partialorder %v1660_v5, 0.0004427343  ;;  %v1676_v41 = vadd.f32 1.0, %v1675_v8 }
 0x36b   : > { %v1743_v20 = vpack.c.bf16 %v1723_v46, %v1721_v25  ;;  %v1728_v51 = vsel %vm1503_vm7, %v4429_v9, %v1712_v15  ;;  %v1730_v35 = vsel %vm1505_vm8, %v4453_v48, %v1714_v59  ;;  %v1644_v14 = vsel %vm4644_vm11, %v1641_v40, %v1638_v43  ;;  %v1774_v0 = vpop.permute.xlu1 %1773 }
 0x36c   : > { %v1678_v62 = vand.u32 2147483647, %v4571_v52  ;;  %v1662_v4 = vsel %vm1661_vm12, %v1659_v31, %v1656_v54  ;;  %v1709_v32 = vmul.f32 0.01, %v1644_v14  ;;  %v1746_v56 = vpack.c.bf16 %v1730_v35, %v1728_v51 }
 0x36d   : > { %1831 = vmatprep.subr.bf16.mxu1 %v1743_v20  ;;  %v2814_v34 = vpop.eup %2813  ;;  %vm1500_vm13 = vcmp.gt.f32.partialorder %v4415_v28, 20.0  ;;  %v1711_v9 = vmul.f32 0.01, %v1662_v4  ;;  %v1694_v38 = vadd.f32 1.0, %v1693_v17  ;;  %vm1502_vm14 = vcmp.gt.f32.partialorder %v4433_v33, 20.0 }
 0x36e   : > { %1832 = vmatpush1.bf16.msra.mxu1 %v1742_v12  ;;  %v1674_v48 = vmul.f32 0.6931472, %v2814_v34  ;;  %v1677_v23 = vmul.f32 %v4571_v52, %v1676_v41  ;;  %v1696_v57 = vand.u32 2147483647, %v4611_v37  ;;  %v1725_v39 = vsel %vm1500_vm13, %v4401_v58, %v1709_v32 }
 0x36f   : > { %v1727_v30 = vsel %vm1502_vm14, %v4420_v21, %v1711_v9  ;;  %vm1679_vm15 = vcmp.lt.f32.partialorder %v1678_v62, 0.0004427343  ;;  %v1695_v28 = vmul.f32 %v4611_v37, %v1694_v38  ;;  %vm1504_vm1 = vcmp.gt.f32.partialorder %v4461_v27, 20.0  ;;  %v2749_v37 = vld [vmem:[#allocation17] sm:$0xff]   ;;  %v2751_v27 = vld [vmem:[#allocation17 + $0x10] sm:$0xff]   ;;  %v1784_v38 = vpop.permute.xlu1 %1783 }
 0x370   : > { %v2816_v2 = vpop.eup %2815  ;;  %v1745_v12 = vpack.c.bf16 %v1727_v30, %v1725_v39  ;;  %v1680_v50 = vsel %vm1679_vm15, %v1677_v23, %v1674_v48  ;;  %vm1697_vm0 = vcmp.lt.f32.partialorder %v1696_v57, 0.0004427343  ;;  %vm1506_vm2 = vcmp.gt.f32.partialorder %v4492_v55, 20.0 }
 0x371   : > { %v1692_v53 = vmul.f32 0.6931472, %v2816_v2  ;;  %v1713_v45 = vmul.f32 0.01, %v1680_v50  ;;  %vm1816_vm3 = vcmask 523264  }
 0x372   : > { %1833 = vmatprep.subr.bf16.mxu1 %v1745_v12 }
 0x373   : > { %1834 = vmatpush1.bf16.msra.mxu1 %v1744_v42  ;;  %v1698_v33 = vsel %vm1697_vm0, %v1695_v28, %v1692_v53  ;;  %v1729_v58 = vsel %vm1504_vm1, %v4439_v36, %v1713_v45  ;;  %v2752_v36 = vld [vmem:[#allocation17 + $0x18] sm:$0xff]  }
 0x374   : > { %v1715_v52 = vmul.f32 0.01, %v1698_v33 }
 0x376   : > { %v1731_v21 = vsel %vm1506_vm2, %v4482_v63, %v1715_v52  ;;  %v1759_v63 = vpop.permute.xlu0 %1758 }
 0x377   : > { %v1747_v24 = vpack.c.bf16 %v1731_v21, %v1729_v58 }
 0x379   : > { %1835 = vmatprep.subr.bf16.mxu1 %v1747_v24 }
 0x37a   : > { %1836 = vmatpush1.bf16.msra.mxu1 %v1746_v56  ;;  %v1769_v5 = vpop.permute.xlu0 %1768 }
 0x37d   : > { %2545 = vmatmul.mubr.msk.bf16.vlgmr.msra.gmra.mrb[16].mxu1 %vm1816_vm3, %v2749_v37 }
 0x37e   : > { %1871 = vmatprep.mubr.bf16.mxu1 %v5264_v11  ;;  %v1779_v14 = vpop.permute.xlu0 %1778 }
 0x385   : > { %2546 = vmatmul.mubr.msk.bf16.gmra.mrb[20].mxu1 %vm1816_vm3, %v2750_v1 }
 0x386   : > { %1881 = vmatprep.mubr.bf16.mxu1 %v5264_v11 }
 0x38d   : > { %2547 = vmatmul.mubr.msk.bf16.gmra.mrb[24].mxu1 %vm1816_vm3, %v2751_v27 }
 0x38e   : > { %1891 = vmatprep.mubr.bf16.mxu1 %v5264_v11 }
 0x395   : > { %2548 = vmatmul.mubr.msk.bf16.gmra.mrb[28].mxu1 %vm1816_vm3, %v2752_v36 }
 0x396   : > { %2212 = vmatprep.mubr.bf16.mxu1 %v5264_v11 }
 0x450   : > { %v1863_v55 = vpop.f32.mrb[16].mxu1 }
 0x451   : > { %v4691_v49 = vadd.f32 %v1863_v55, %v1759_v63  ;;  %v1865_v42 = vpop.f32.mrb[17].mxu1 }
 0x452   : > { %v1867_v29 = vpop.f32.mrb[18].mxu1  ;;  %v4699_v18 = vadd.f32 %v1865_v42, %v1759_v63  ;;  %v1789_v63 = vpop.permute.xlu0 %1788 }
 0x453   : > { %v4694_v26 = vmul.f32 100.0, %v4691_v49  ;;  %v4696_v19 = vadd.f32 %v1867_v29, %v1764_v47  ;;  %v1869_v10 = vpop.f32.mrb[19].mxu1 }
 0x454   : > { %v4704_v11 = vadd.f32 %v1869_v10, %v1764_v47  ;;  %v4708_v7 = vmul.f32 100.0, %v4699_v18 }
 0x455   : > { %v1934_v22 = vmin.f32 %v4694_v26, 20.0  ;;  %v4702_v3 = vmul.f32 100.0, %v4696_v19  ;;  %vm1918_vm4 = vcmp.gt.f32.partialorder %v4694_v26, 20.0 }
 0x456   : > { %v4713_v44 = vmul.f32 100.0, %v4704_v11  ;;  %v1935_v43 = vmin.f32 %v4708_v7, 20.0  ;;  %vm1919_vm2 = vcmp.gt.f32.partialorder %v4708_v7, 20.0 }
 0x457   : > { %v1950_v61 = vmul.f32 1.442695, %v1934_v22  ;;  %v1936_v60 = vmin.f32 %v4702_v3, 20.0  ;;  %vm1920_vm6 = vcmp.gt.f32.partialorder %v4702_v3, 20.0 }
 0x458   : > { %v1873_v13 = vpop.f32.mrb[20].mxu1  ;;  %v1937_v31 = vmin.f32 %v4713_v44, 20.0  ;;  %v1952_v32 = vmul.f32 1.442695, %v1935_v43 }
 0x459   : > { %2817 = vpow2.f32 %v1950_v61  ;;  %v1954_v8 = vmul.f32 1.442695, %v1936_v60  ;;  %v4710_v15 = vadd.f32 %v1873_v13, %v1769_v5  ;;  %v1875_v16 = vpop.f32.mrb[21].mxu1 }
 0x45a   : > { %v1877_v25 = vpop.f32.mrb[22].mxu1  ;;  %v4718_v40 = vadd.f32 %v1875_v16, %v1769_v5  ;;  %v1956_v48 = vmul.f32 1.442695, %v1937_v31  ;;  %v1794_v31 = vpop.permute.xlu1 %1793 }
 0x45b   : > { %2819 = vpow2.f32 %v1954_v8  ;;  %v4716_v46 = vmul.f32 100.0, %v4710_v15  ;;  %v4720_v6 = vadd.f32 %v1877_v25, %v1774_v0  ;;  %v1879_v59 = vpop.f32.mrb[23].mxu1 }
 0x45c   : > { %v4722_v20 = vadd.f32 %v1879_v59, %v1774_v0  ;;  %v4731_v51 = vmul.f32 100.0, %v4718_v40 }
 0x45d   : > { %v1938_v17 = vmin.f32 %v4716_v46, 20.0  ;;  %v4727_v54 = vmul.f32 100.0, %v4720_v6  ;;  %vm1922_vm9 = vcmp.gt.f32.partialorder %v4716_v46, 20.0 }
 0x45e   : > { %v4735_v62 = vmul.f32 100.0, %v4722_v20  ;;  %v1939_v39 = vmin.f32 %v4731_v51, 20.0 }
 0x45f   : > { %v1958_v41 = vmul.f32 1.442695, %v1938_v17  ;;  %v1940_v35 = vmin.f32 %v4727_v54, 20.0  ;;  %vm1924_vm11 = vcmp.gt.f32.partialorder %v4727_v54, 20.0 }
 0x460   : > { %v1883_v4 = vpop.f32.mrb[24].mxu1  ;;  %v1941_v53 = vmin.f32 %v4735_v62, 20.0  ;;  %v1960_v24 = vmul.f32 1.442695, %v1939_v39 }
 0x461   : > { %2821 = vpow2.f32 %v1958_v41  ;;  %v1962_v56 = vmul.f32 1.442695, %v1940_v35  ;;  %v4737_v34 = vadd.f32 %v1883_v4, %v1779_v14  ;;  %v1885_v9 = vpop.f32.mrb[25].mxu1 }
 0x462   : > { %v1887_v23 = vpop.f32.mrb[26].mxu1  ;;  %v4746_v28 = vadd.f32 %v1885_v9, %v1779_v14  ;;  %v1964_v1 = vmul.f32 1.442695, %v1941_v53 }
 0x463   : > { %v2818_v57 = vpop.eup %2817  ;;  %2823 = vpow2.f32 %v1962_v56  ;;  %v4741_v30 = vmul.f32 100.0, %v4737_v34  ;;  %v4743_v2 = vadd.f32 %v1887_v23, %v1784_v38  ;;  %v1889_v12 = vpop.f32.mrb[27].mxu1 }
 0x464   : > { %v1982_v50 = vadd.f32 1.0, %v2818_v57  ;;  %2825 = vpow2.f32 %v1952_v32  ;;  %v1985_v21 = vmul.f32 -0.5, %v2818_v57  ;;  %v4753_v27 = vmul.f32 100.0, %v4746_v28 }
 0x465   : > { %v2820_v45 = vpop.eup %2819  ;;  %v1942_v33 = vmin.f32 %v4741_v30, 20.0  ;;  %v4750_v52 = vmul.f32 100.0, %v4743_v2  ;;  %v1988_v47 = vand.u32 2147483647, %v2818_v57  ;;  %v4756_v10 = vadd.f32 %v1889_v12, %v1784_v38 }
 0x466   : > { %2827 = vlog2.f32 %v1982_v50  ;;  %v2000_v58 = vadd.f32 1.0, %v2820_v45  ;;  %v2003_v29 = vmul.f32 -0.5, %v2820_v45  ;;  %v1986_v5 = vadd.f32 1.0, %v1985_v21 }
 0x467   : > { %2829 = vpow2.f32 %v1956_v48  ;;  %v1966_v37 = vmul.f32 1.442695, %v1942_v33  ;;  %v1944_v55 = vmin.f32 %v4750_v52, 20.0  ;;  %v2006_v13 = vand.u32 2147483647, %v2820_v45 }
 0x468   : > { %2831 = vlog2.f32 %v2000_v58  ;;  %v1893_v36 = vpop.f32.mrb[28].mxu1  ;;  %v1943_v25 = vmin.f32 %v4753_v27, 20.0  ;;  %v4764_v43 = vmul.f32 100.0, %v4756_v10  ;;  %v2004_v41 = vadd.f32 1.0, %v2003_v29 }
 0x469   : > { %2833 = vpow2.f32 %v1966_v37  ;;  %v1895_v42 = vpop.f32.mrb[29].mxu1  ;;  %v4758_v22 = vadd.f32 %v1893_v36, %v1789_v63  ;;  %v1970_v8 = vmul.f32 1.442695, %v1944_v55  ;;  %v1987_v32 = vmul.f32 %v2818_v57, %v1986_v5 }
 0x46a   : > { %v1897_v61 = vpop.f32.mrb[30].mxu1  ;;  %2835 = vpow2.f32 %v1960_v24  ;;  %vm4773_vm5 = vcmp.lt.f32.partialorder %v1988_v47, 0.0004427343  ;;  %vm4778_vm7 = vcmp.lt.f32.partialorder %v2006_v13, 0.0004427343  ;;  %v4785_v12 = vadd.f32 %v1895_v42, %v1789_v63 }
 0x46b   : > { %v2822_v60 = vpop.eup %2821  ;;  %v1899_v16 = vpop.f32.mrb[31].mxu1  ;;  %2837 = vpow2.f32 %v1964_v1  ;;  %v4767_v17 = vmul.f32 100.0, %v4758_v22  ;;  %v4782_v38 = vadd.f32 %v1897_v61, %v1794_v31  ;;  %v1968_v23 = vmul.f32 1.442695, %v1943_v25 }
 0x46c   : > { %v2018_v0 = vadd.f32 1.0, %v2822_v60  ;;  %2839 = vpow2.f32 %v1970_v8  ;;  %v2021_v35 = vmul.f32 -0.5, %v2822_v60  ;;  %v2024_v53 = vand.u32 2147483647, %v2822_v60 }
 0x46d   : > { %v4761_v59 = vpop.eup %2823  ;;  %v1946_v39 = vmin.f32 %v4767_v17, 20.0  ;;  %v1945_v58 = vmin.f32 %v4764_v43, 20.0  ;;  %v2005_v24 = vmul.f32 %v2820_v45, %v2004_v41  ;;  %v4795_v42 = vmul.f32 100.0, %v4782_v38 }
 0x46e   : > { %2841 = vlog2.f32 %v2018_v0  ;;  %v2036_v14 = vadd.f32 1.0, %v4761_v59  ;;  %v4770_v4 = vpop.eup %2825  ;;  %v2039_v33 = vmul.f32 -0.5, %v4761_v59  ;;  %v2022_v37 = vadd.f32 1.0, %v2021_v35 }
 0x46f   : > { %v1974_v1 = vmul.f32 1.442695, %v1946_v39  ;;  %v1991_v36 = vadd.f32 1.0, %v4770_v4  ;;  %v4797_v29 = vadd.f32 %v1899_v16, %v1794_v31  ;;  %v4800_v13 = vmul.f32 100.0, %v4785_v12 }
 0x470   : > { %v2828_v48 = vpop.eup %2827  ;;  %2843 = vlog2.f32 %v2036_v14  ;;  %vm4806_vm8 = vcmp.lt.f32.partialorder %v2024_v53, 0.0004427343  ;;  %v2040_v25 = vadd.f32 1.0, %v2039_v33  ;;  %v1972_v41 = vmul.f32 1.442695, %v1945_v58 }
 0x471   : > { %v4787_v57 = vpop.eup %2829  ;;  %v1984_v50 = vmul.f32 0.6931472, %v2828_v48  ;;  %2845 = vpow2.f32 %v1968_v23  ;;  %v2042_v31 = vand.u32 2147483647, %v4761_v59  ;;  %v2023_v56 = vmul.f32 %v2822_v60, %v2022_v37 }
 0x472   : > { %v2832_v21 = vpop.eup %2831  ;;  %v1948_v48 = vmin.f32 %v4795_v42, 20.0  ;;  %v4815_v9 = vmul.f32 100.0, %v4797_v29  ;;  %v1947_v60 = vmin.f32 %v4800_v13, 20.0  ;;  %vm1926_vm13 = vcmp.gt.f32.partialorder %v4741_v30, 20.0 }
 0x473   : > { %v2834_v55 = vpop.eup %2833  ;;  %v1990_v47 = vsel %vm4773_vm5, %v1987_v32, %v1984_v50  ;;  %v2002_v63 = vmul.f32 0.6931472, %v2832_v21  ;;  %v2041_v21 = vmul.f32 %v4761_v59, %v2040_v25  ;;  %vm2043_vm10 = vcmp.lt.f32.partialorder %v2042_v31, 0.0004427343 }
 0x474   : > { %v2126_v61 = vmul.f32 0.01, %v1990_v47  ;;  %v2054_v5 = vadd.f32 1.0, %v2834_v55  ;;  %v4802_v45 = vpop.eup %2835  ;;  %v2057_v14 = vmul.f32 -0.5, %v2834_v55  ;;  %v2060_v26 = vand.u32 2147483647, %v2834_v55 }
 0x475   : > { %v2008_v8 = vsel %vm4778_vm7, %v2005_v24, %v2002_v63  ;;  %v4810_v35 = vpop.eup %2837  ;;  %v1949_v47 = vmin.f32 %v4815_v9, 20.0  ;;  %v1994_v25 = vmul.f32 -0.5, %v4770_v4  ;;  %vm1928_vm14 = vcmp.gt.f32.partialorder %v4750_v52, 20.0 }
 0x476   : > { %v2128_v16 = vmul.f32 0.01, %v2008_v8  ;;  %2847 = vlog2.f32 %v2054_v5  ;;  %v2840_v32 = vpop.eup %2839  ;;  %v4820_v39 = vsel %vm1918_vm4, %v4691_v49, %v2126_v61  ;;  %v2058_v37 = vadd.f32 1.0, %v2057_v14 }
 0x477   : > { %2849 = vpow2.f32 %v1974_v1  ;;  %v2072_v53 = vadd.f32 1.0, %v2840_v32  ;;  %v1978_v49 = vmul.f32 1.442695, %v1948_v48  ;;  %v2075_v1 = vmul.f32 -0.5, %v2840_v32 }
 0x478   : > { %v2842_v23 = vpop.eup %2841  ;;  %v4825_v50 = vsel %vm1920_vm6, %v4696_v19, %v2128_v16  ;;  %2851 = vpow2.f32 %v1972_v41  ;;  %v1976_v61 = vmul.f32 1.442695, %v1947_v60  ;;  %vm4838_vm12 = vcmp.lt.f32.partialorder %v2060_v26, 0.0004427343 }
 0x479   : > { %v2159_v33 = vpack.c.bf16 %v4825_v50, %v4820_v39  ;;  %v2020_v58 = vmul.f32 0.6931472, %v2842_v23  ;;  %2853 = vlog2.f32 %v2072_v53  ;;  %v2009_v41 = vadd.f32 1.0, %v4787_v57 }
 0x47a   : > { %v2844_v24 = vpop.eup %2843  ;;  %2855 = vpow2.f32 %v1978_v49  ;;  %v2059_v16 = vmul.f32 %v2834_v55, %v2058_v37  ;;  %v2076_v14 = vadd.f32 1.0, %v2075_v1  ;;  %v2078_v31 = vand.u32 2147483647, %v2840_v32 }
 0x47b   : > { %v2026_v3 = vsel %vm4806_vm8, %v2023_v56, %v2020_v58  ;;  %v2038_v19 = vmul.f32 0.6931472, %v2844_v24  ;;  %2857 = vlog2.f32 %v1991_v36  ;;  %v4836_v5 = vpop.eup %2845  ;;  %v1980_v56 = vmul.f32 1.442695, %v1949_v47 }
 0x47c   : > { %v2130_v63 = vmul.f32 0.01, %v2026_v3  ;;  %2859 = vlog2.f32 %v2009_v41  ;;  %v2027_v23 = vadd.f32 1.0, %v4802_v45  ;;  %v1997_v58 = vand.u32 2147483647, %v4770_v4 }
 0x47d   : > { %v2044_v59 = vsel %vm2043_vm10, %v2041_v21, %v2038_v19  ;;  %v2012_v21 = vmul.f32 -0.5, %v4787_v57  ;;  %v2015_v24 = vand.u32 2147483647, %v4787_v57  ;;  %v2077_v49 = vmul.f32 %v2840_v32, %v2076_v14 }
 0x47e   : > { %v2132_v8 = vmul.f32 0.01, %v2044_v59  ;;  %v4847_v54 = vsel %vm1922_vm9, %v4710_v15, %v2130_v63  ;;  %v1995_v15 = vadd.f32 1.0, %v1994_v25  ;;  %2861 = vlog2.f32 %v2027_v23 }
 0x47f   : > { %2863 = vpow2.f32 %v1976_v61  ;;  %vm4867_vm15 = vcmp.lt.f32.partialorder %v2078_v31, 0.0004427343  ;;  %v2013_v47 = vadd.f32 1.0, %v2012_v21  ;;  %v2045_v63 = vadd.f32 1.0, %v4810_v35 }
 0x480   : > { %v2848_v48 = vpop.eup %2847  ;;  %v4850_v36 = vsel %vm1924_vm11, %v4720_v6, %v2132_v8  ;;  %v1996_v8 = vmul.f32 %v4770_v4, %v1995_v15  ;;  %vm4875_vm0 = vcmp.lt.f32.partialorder %v1997_v58, 0.0004427343  ;;  %vm4879_vm1 = vcmp.lt.f32.partialorder %v2015_v24, 0.0004427343 }
 0x481   : > { %v4853_v53 = vpop.eup %2849  ;;  %v2161_v55 = vpack.c.bf16 %v4850_v36, %v4847_v54  ;;  %v2056_v60 = vmul.f32 0.6931472, %v2848_v48  ;;  %v2030_v4 = vmul.f32 -0.5, %v4802_v45  ;;  %v2014_v23 = vmul.f32 %v4787_v57, %v2013_v47 }
 0x482   : > { %v2090_v46 = vadd.f32 1.0, %v4853_v53  ;;  %v4861_v6 = vpop.eup %2851  ;;  %v2093_v41 = vmul.f32 -0.5, %v4853_v53  ;;  %v2096_v31 = vand.u32 2147483647, %v4853_v53  ;;  %v2048_v15 = vmul.f32 -0.5, %v4810_v35 }
 0x483   : > { %v2062_v37 = vsel %vm4838_vm12, %v2059_v16, %v2056_v60  ;;  %v2854_v26 = vpop.eup %2853  ;;  %v2033_v60 = vand.u32 2147483647, %v4802_v45  ;;  %v2063_v30 = vadd.f32 1.0, %v4836_v5  ;;  %vm1921_vm6 = vcmp.gt.f32.partialorder %v4713_v44, 20.0 }
 0x484   : > { %2865 = vlog2.f32 %v2090_v46  ;;  %v2134_v19 = vmul.f32 0.01, %v2062_v37  ;;  %v2074_v1 = vmul.f32 0.6931472, %v2854_v26  ;;  %v4872_v59 = vpop.eup %2855  ;;  %v2094_v24 = vadd.f32 1.0, %v2093_v41 }
 0x485   : > { %2867 = vpow2.f32 %v1980_v56  ;;  %v2858_v0 = vpop.eup %2857  ;;  %v2108_v16 = vadd.f32 1.0, %v4872_v59  ;;  %v2031_v37 = vadd.f32 1.0, %v2030_v4  ;;  %vm4908_vm4 = vcmp.lt.f32.partialorder %v2096_v31, 0.0004427343 }
 0x486   : > { %v2080_v25 = vsel %vm4867_vm15, %v2077_v49, %v2074_v1  ;;  %v1993_v56 = vmul.f32 0.6931472, %v2858_v0  ;;  %2869 = vlog2.f32 %v2045_v63  ;;  %v4893_v48 = vsel %vm1926_vm13, %v4737_v34, %v2134_v19  ;;  %v2860_v58 = vpop.eup %2859 }
 0x487   : > { %v2136_v14 = vmul.f32 0.01, %v2080_v25  ;;  %2871 = vlog2.f32 %v2108_v16  ;;  %v2011_v57 = vmul.f32 0.6931472, %v2860_v58  ;;  %vm4917_vm5 = vcmp.lt.f32.partialorder %v2033_v60, 0.0004427343 }
 0x488   : > { %v1999_v46 = vsel %vm4875_vm0, %v1996_v8, %v1993_v56  ;;  %v2862_v26 = vpop.eup %2861  ;;  %2873 = vlog2.f32 %v2063_v30  ;;  %v2081_v63 = vadd.f32 1.0, %v4861_v6  ;;  %v2049_v0 = vadd.f32 1.0, %v2048_v15 }
 0x489   : > { %v4900_v21 = vsel %vm1928_vm14, %v4743_v2, %v2136_v14  ;;  %v2111_v2 = vmul.f32 -0.5, %v4872_v59  ;;  %v2127_v52 = vmul.f32 0.01, %v1999_v46  ;;  %v4913_v3 = vpop.eup %2863  ;;  %v2017_v19 = vsel %vm4879_vm1, %v2014_v23, %v2011_v57 }
 0x48a   : > { %v2163_v34 = vpack.c.bf16 %v4900_v21, %v4893_v48  ;;  %v2029_v1 = vmul.f32 0.6931472, %v2862_v26  ;;  %v2129_v61 = vmul.f32 0.01, %v2017_v19  ;;  %v2051_v25 = vand.u32 2147483647, %v4810_v35 }
 0x48b   : > { %vm1923_vm7 = vcmp.gt.f32.partialorder %v4731_v51, 20.0  ;;  %vm1925_vm8 = vcmp.gt.f32.partialorder %v4735_v62, 20.0  ;;  %v2032_v41 = vmul.f32 %v4802_v45, %v2031_v37  ;;  %v2066_v16 = vmul.f32 -0.5, %v4836_v5 }
 0x48c   : > { %2875 = vlog2.f32 %v2081_v63  ;;  %vm1930_vm9 = vcmp.gt.f32.partialorder %v4767_v17, 20.0  ;;  %v2095_v14 = vmul.f32 %v4853_v53, %v2094_v24  ;;  %vm1932_vm10 = vcmp.gt.f32.partialorder %v4795_v42, 20.0 }
 0x48d   : > { %v2112_v31 = vadd.f32 1.0, %v2111_v2  ;;  %v2143_v56 = vsel %vm1919_vm2, %v4699_v18, %v2127_v52  ;;  %v2145_v45 = vsel %vm1921_vm6, %v4704_v11, %v2129_v61  ;;  %v2114_v23 = vand.u32 2147483647, %v4872_v59  ;;  %v5309_v18 = vld [vmem:[#allocation39_spill] sm:$0xff] }
 0x48e   : > { %v2866_v8 = vpop.eup %2865  ;;  %v2160_v60 = vpack.c.bf16 %v2145_v45, %v2143_v56  ;;  %v2035_v58 = vsel %vm4917_vm5, %v2032_v41, %v2029_v1  ;;  %v2099_v46 = vadd.f32 1.0, %v4913_v3  ;;  %v2050_v30 = vmul.f32 %v4810_v35, %v2049_v0 }
 0x48f   : > { %v2092_v32 = vmul.f32 0.6931472, %v2866_v8  ;;  %v4928_v4 = vpop.eup %2867  ;;  %vm4946_vm11 = vcmp.lt.f32.partialorder %v2051_v25, 0.0004427343  ;;  %v2084_v11 = vmul.f32 -0.5, %v4861_v6  ;;  %v2067_v24 = vadd.f32 1.0, %v2066_v16 }
 0x490   : > { %v2870_v53 = vpop.eup %2869  ;;  %2180 = vmatprep.subr.bf16.mxu1 %v2160_v60  ;;  %2877 = vlog2.f32 %v2099_v46  ;;  %v2117_v57 = vadd.f32 1.0, %v4928_v4  ;;  %v2113_v26 = vmul.f32 %v4872_v59, %v2112_v31  ;;  %v2131_v35 = vmul.f32 0.01, %v2035_v58 }
 0x491   : > { %v2098_v15 = vsel %vm4908_vm4, %v2095_v14, %v2092_v32  ;;  %v2872_v7 = vpop.eup %2871  ;;  %v2047_v44 = vmul.f32 0.6931472, %v2870_v53  ;;  %2181 = vmatpush1.bf16.msra.mxu1 %v2159_v33  ;;  %v2069_v49 = vand.u32 2147483647, %v4836_v5  ;;  %vm2115_vm12 = vcmp.lt.f32.partialorder %v2114_v23, 0.0004427343 }
 0x492   : > { %v2110_v37 = vmul.f32 0.6931472, %v2872_v7  ;;  %v2138_v2 = vmul.f32 0.01, %v2098_v15  ;;  %2879 = vlog2.f32 %v2117_v57  ;;  %v2874_v19 = vpop.eup %2873  ;;  %v2085_v63 = vadd.f32 1.0, %v2084_v11 }
 0x493   : > { %v2053_v52 = vsel %vm4946_vm11, %v2050_v30, %v2047_v44  ;;  %v2102_v8 = vmul.f32 -0.5, %v4913_v3  ;;  %v2065_v61 = vmul.f32 0.6931472, %v2874_v19  ;;  %v2068_v39 = vmul.f32 %v4836_v5, %v2067_v24  ;;  %v2171_v30 = vpop.permute.xlu0 %2170 }
 0x494   : > { %v2116_v1 = vsel %vm2115_vm12, %v2113_v26, %v2110_v37  ;;  %v2133_v47 = vmul.f32 0.01, %v2053_v52  ;;  %v2087_v50 = vand.u32 2147483647, %v4861_v6  ;;  %v2147_v33 = vsel %vm1923_vm7, %v4718_v40, %v2131_v35 }
 0x495   : > { %v2140_v59 = vmul.f32 0.01, %v2116_v1  ;;  %vm2070_vm13 = vcmp.lt.f32.partialorder %v2069_v49, 0.0004427343  ;;  %v2120_v25 = vmul.f32 -0.5, %v4928_v4  ;;  %v2154_v41 = vsel %vm1930_vm9, %v4758_v22, %v2138_v2 }
 0x496   : > { %v2149_v0 = vsel %vm1925_vm8, %v4722_v20, %v2133_v47  ;;  %v2876_v32 = vpop.eup %2875  ;;  %v2071_v14 = vsel %vm2070_vm13, %v2068_v39, %v2065_v61  ;;  %v2086_v31 = vmul.f32 %v4861_v6, %v2085_v63  ;;  %v2103_v62 = vadd.f32 1.0, %v2102_v8 }
 0x497   : > { %v2156_v5 = vsel %vm1932_vm10, %v4782_v38, %v2140_v59  ;;  %v2162_v16 = vpack.c.bf16 %v2149_v0, %v2147_v33  ;;  %v2083_v40 = vmul.f32 0.6931472, %v2876_v32  ;;  %vm2088_vm14 = vcmp.lt.f32.partialorder %v2087_v50, 0.0004427343 }
 0x498   : > { %v2165_v51 = vpack.c.bf16 %v2156_v5, %v2154_v41  ;;  %v2135_v20 = vmul.f32 0.01, %v2071_v14  ;;  %v2105_v56 = vand.u32 2147483647, %v4913_v3  ;;  %v2121_v17 = vadd.f32 1.0, %v2120_v25 }
 0x499   : > { %2182 = vmatprep.subr.bf16.mxu1 %v2162_v16  ;;  %v2089_v22 = vsel %vm2088_vm14, %v2086_v31, %v2083_v40  ;;  %v2123_v45 = vand.u32 2147483647, %v4928_v4  ;;  %vm1927_vm15 = vcmp.gt.f32.partialorder %v4753_v27, 20.0  ;;  %vm1929_vm0 = vcmp.gt.f32.partialorder %v4764_v43, 20.0 }
 0x49a   : > { %2183 = vmatpush1.bf16.msra.mxu1 %v2161_v55  ;;  %v2878_v42 = vpop.eup %2877  ;;  %v2137_v38 = vmul.f32 0.01, %v2089_v22  ;;  %v2104_v23 = vmul.f32 %v4913_v3, %v2103_v62  ;;  %v2151_v58 = vsel %vm1927_vm15, %v4746_v28, %v2135_v20  ;;  %vm2106_vm1 = vcmp.lt.f32.partialorder %v2105_v56, 0.0004427343 }
 0x49b   : > { %v2101_v6 = vmul.f32 0.6931472, %v2878_v42  ;;  %v2122_v53 = vmul.f32 %v4928_v4, %v2121_v17  ;;  %vm2124_vm2 = vcmp.lt.f32.partialorder %v2123_v45, 0.0004427343  ;;  %vm1931_vm4 = vcmp.gt.f32.partialorder %v4800_v13, 20.0 }
 0x49c   : > { %v2880_v60 = vpop.eup %2879  ;;  %v2153_v46 = vsel %vm1929_vm0, %v4756_v10, %v2137_v38  ;;  %vm1933_vm5 = vcmp.gt.f32.partialorder %v4815_v9, 20.0  ;;  %v2158_v4 = vld [vmem:[#allocation20] sm:$0x1]  ;;  %v2176_v11 = vrot.slane %v2171_v30, %v5309_v18  ;;  %v3312_v1 = vmov 1966171168  }
 0x49d   : > { %v2164_v54 = vpack.c.bf16 %v2153_v46, %v2151_v58  ;;  %v2107_v36 = vsel %vm2106_vm1, %v2104_v23, %v2101_v6  ;;  %v2119_v55 = vmul.f32 0.6931472, %v2880_v60  ;;  %v2255_v47 = vunpack.c.l.s4 %v3312_v1 }
 0x49e   : > { %v2139_v15 = vmul.f32 0.01, %v2107_v36  ;;  %v5312_v56 = vlaneseq }
 0x49f   : > { %2184 = vmatprep.subr.bf16.mxu1 %v2164_v54  ;;  %v2125_v27 = vsel %vm2124_vm2, %v2122_v53, %v2119_v55  ;;  %v2256_v50 = vunpack.c.0.s8 %v2255_v47 }
 0x4a0   : > { %2185 = vmatpush1.bf16.msra.mxu1 %v2163_v34  ;;  %v2141_v43 = vmul.f32 0.01, %v2125_v27  ;;  %v2155_v28 = vsel %vm1931_vm4, %v4785_v12, %v2139_v15  ;;  %vm2271_vm9 = vcmp.lt.s32.totalorder %v5312_v56, 256 }
 0x4a2   : > { %v2157_v10 = vsel %vm1933_vm5, %v4797_v29, %v2141_v43 }
 0x4a3   : > { %v2166_v3 = vpack.c.bf16 %v2157_v10, %v2155_v28 }
 0x4a5   : > { %2186 = vmatprep.subr.bf16.mxu1 %v2166_v3 }
 0x4a6   : > { %2187 = vmatpush1.bf16.msra.mxu1 %v2165_v51  ;;  %v5310_v51 = vld [vmem:[#allocation38_spill] sm:$0xff] }
 0x4a7   : > { %v2259_v40 = vsub.s32 %v2256_v50, %v5310_v51 }
 0x4a9   : > { %2549 = vmatmul.mubr.msk.bf16.vlgmr.msra.gmra.mrb[32].mxu1 %vm1816_vm3, %v2158_v4 }
 0x57c   : > { %v2214_v48 = vpop.f32.mrb[32].mxu1 }
 0x57d   : > { %v2215_v21 = vadd.f32 %v2214_v48, %v2176_v11  ;;  %v2216_v34 = vpop.f32.mrb[33].mxu1 }
 0x57e   : > { %v2217_v7 = vadd.f32 %v2216_v34, %v2176_v11  ;;  %v2218_v13 = vpop.f32.mrb[34].mxu1 }
 0x57f   : > { %v2221_v44 = vadd.f32 1.0, %v2215_v21  ;;  %v2219_v9 = vpop.f32.mrb[35].mxu1 }
 0x580   : > { %v2222_v24 = vadd.f32 1.0, %v2217_v7 }
 0x581   : > { %v2225_v12 = vmin.f32 %v2221_v44, 20.0  ;;  %vm2223_vm6 = vcmp.gt.f32.partialorder %v2221_v44, 20.0 }
 0x582   : > { %v2226_v57 = vmin.f32 %v2222_v24, 20.0  ;;  %vm2224_vm8 = vcmp.gt.f32.partialorder %v2222_v24, 20.0 }
 0x583   : > { %v2227_v29 = vmul.f32 1.442695, %v2225_v12 }
 0x584   : > { %v2229_v37 = vmul.f32 1.442695, %v2226_v57 }
 0x585   : > { %2881 = vpow2.f32 %v2227_v29 }
 0x586   : > { %2883 = vpow2.f32 %v2229_v37 }
 0x58f   : > { %v2882_v26 = vpop.eup %2881 }
 0x590   : > { %v2884_v35 = vpop.eup %2883  ;;  %v2231_v49 = vadd.f32 1.0, %v2882_v26  ;;  %v2234_v52 = vmul.f32 -0.5, %v2882_v26  ;;  %v2237_v8 = vand.u32 2147483647, %v2882_v26 }
 0x591   : > { %v2240_v2 = vadd.f32 1.0, %v2884_v35  ;;  %v2243_v19 = vmul.f32 -0.5, %v2884_v35  ;;  %v2246_v61 = vand.u32 2147483647, %v2884_v35 }
 0x592   : > { %2885 = vlog2.f32 %v2231_v49  ;;  %v2235_v63 = vadd.f32 1.0, %v2234_v52  ;;  %vm2238_vm3 = vcmp.lt.f32.partialorder %v2237_v8, 0.0004427343 }
 0x593   : > { %2887 = vlog2.f32 %v2240_v2  ;;  %v2244_v59 = vadd.f32 1.0, %v2243_v19  ;;  %vm2247_vm7 = vcmp.lt.f32.partialorder %v2246_v61, 0.0004427343 }
 0x594   : > { %v2236_v25 = vmul.f32 %v2882_v26, %v2235_v63 }
 0x595   : > { %v2245_v41 = vmul.f32 %v2884_v35, %v2244_v59 }
 0x59c   : > { %v2886_v39 = vpop.eup %2885 }
 0x59d   : > { %v2888_v33 = vpop.eup %2887  ;;  %v2233_v0 = vmul.f32 0.6931472, %v2886_v39 }
 0x59e   : > { %v2242_v32 = vmul.f32 0.6931472, %v2888_v33 }
 0x59f   : > { %v2239_v5 = vsel %vm2238_vm3, %v2236_v25, %v2233_v0 }
 0x5a0   : > { %v2249_v16 = vsel %vm2223_vm6, %v2221_v44, %v2239_v5  ;;  %v2248_v14 = vsel %vm2247_vm7, %v2245_v41, %v2242_v32 }
 0x5a1   : > { %v2250_v31 = vsel %vm2224_vm8, %v2222_v24, %v2248_v14 }
 0x5a2   : > { %v2253_v62 = vcombine.low %v2249_v16, %v2250_v31 }
 0x5a4   : > { %v2260_v20 = vrot.slane %v2253_v62, %v2259_v40 }
 0x5a6   : > { %v2267_v22 = vrot.slane %v2260_v20, %v2259_v40 }
 0x5a8   : > { %2273 = vst.msk [vmem:[%s622_s0] sm:$0x3] %vm2271_vm9, %v2267_v22 }
 0x5a9   : > { %3216 = shalt.err (!%p3213_p0)
}
 0x5aa   : > { %s3217_s21 = scalar_lea.hbm %s5003_s18, 32  ;;  %s3221_s7 = scalar_lea.hbm %s5313_s5, 64 }
 0x5ab   : > { %p3218_p5 = scmp.ne.s32.totalorder %s5003_s18, %s3217_s21  ;;  %p3222_p4 = scmp.lt.u32.totalorder %s5003_s18, %s5313_s5 }
 0x5ac   : > { %p3223_p10 = scmp.lt.u32.totalorder %s3221_s7, %s3217_s21  ;;  %p3225_p7 = scmp.lt.u32.totalorder %s3217_s21, %s5003_s18 }
 0x5ad   : > { %p3219_p8 = pnand %p3218_p5, %p5314_p9 }
 0x5ae   : > { %p3224_p6 = por %p3223_p10, %p3222_p4 }
 0x5af   : > { %p3220_p11 = pneg %p3219_p8 }
 0x5b0   : > { %p3226_p1 = por %p3225_p7, %p3224_p6 }
 0x5b2   : > { %p3227_p13 = pnand %p3226_p1, %p3220_p11 }
 0x5b4   : > { %3230 = shalt.err (!%p3227_p13)
}
 0x5b5   : > { %2629 = dma.vmem_to_hbm [thread:$0]  (%p5314_p9), %s5005_s22, 32, %s5003_s18, %s2275_s13  }
 0x5b6 PF: > { %s5315_s16 = sld [smem:[#allocation30_spill]]  ;;  %s5316_s30 = sld [smem:[#allocation37_spill]] }
 0x5b7   : > { %p5318_p2 = scmp.ge.s32.totalorder %s3293_s26, 2 }
 0x5bc   : > { %s2301_s1 = sand.u32 1, %s5315_s16   ;;  %p5317_p3 = scmp.ne.s32.totalorder %s5316_s30, 0 }
 0x5bd   : > { %s2302_s25 = scalar_lea.sflag [#allocation5], %s2301_s1 }
 0x5be   : > { %p2667_p12 = pnand %p5318_p2, %p5317_p3 }
 0x5c0   : > { %3276 = dma.done.wait (!%p2667_p12), %s2302_s25, 32  }
 0x5c1   : > { %3278 = vsyncadd (!%p2667_p12), %s2302_s25, 4294967264  ;;  %s5319_s26 = sld [smem:[#allocation33_spill]]  ;;  %s5320_s19 = sld [smem:[#allocation31_spill]] }
 0x5c2   : > { %s5321_s25 = sld [smem:[#allocation34_spill]]  ;;  %s5322_s23 = smov %s3285_s24 }
 0x5c7   : > { %p34_p0 = scmp.ge.s32.totalorder %s5319_s26, 4   ;;  %s5323_s24 = smov %s5320_s19 }
 0x5c9   :  { %36 = sbr.rel (!%p34_p0) target bundleno = 21 (0x15), region = 173 }
 0x5d0   :  { %2307 = vsyncpa [#allocation4], 1 }
 0x5d1   :  { %2309 = vsyncpa [#allocation4 + $0x1], 1 }
 0x5d2   :  { %2310 = vsyncpa [#allocation7], 1 }
 0x5d3   :  { %2312 = vsyncpa [#allocation7 + $0x1], 1 }
 0x5d4   :  { %2313 = vsyncpa [#allocation10], 1 }
 0x5d5   :  { %2315 = vsyncpa [#allocation10 + $0x1], 1 }
 0x5d6   :  { %2316 = vsyncpa [#allocation13], 1 }
 0x5d7   :  { %2317 = vsyncpa [#allocation16], 1 }
 0x5d8   :  { %2318 = vsyncpa [#allocation19], 1 }
 0x5d9   :  { %2319 = vsyncpa [#allocation5], 1 }
 0x5da   :  { %2321 = vsyncpa [#allocation5 + $0x1], 1 }

</bundles_post_ra>
